<compile_context>
chip_gen: v6e
topology: v6e:2x2x1
jax: 0.10.0
libtpu: 0.0.40
codegen_flags: <defaults>
</compile_context>

<pallas_src>
import jax
import jax.numpy as jnp
from jax.experimental import pallas as pl
from jax.experimental.pallas import tpu as pltpu

BN_EPS = 1e-5  # PyTorch BatchNorm1d default eps


def encoder_head_kernel(feat_ref, w_ref, pool_ref, b_ref, gamma_ref, beta_ref,
                        out_ref):
    # --- nn.Linear applied to every spatial position (MXU, bf16 x bf16 -> f32) ---
    prod = jnp.dot(feat_ref[...], w_ref[...],
                   preferred_element_type=jnp.float32)          # (B*HW, E) f32

    # --- AdaptiveAvgPool2d folded in as a tiny block-diagonal matmul ---
    # pool_ref is (B, B*HW) with 1/(H*W) on row b over columns [b*HW, (b+1)*HW).
    emb = jnp.dot(pool_ref[...], prod,
                  preferred_element_type=jnp.float32)            # (B, E) f32
    emb = emb + b_ref[...]

    # --- nn.BatchNorm1d(embed_size): training-mode per-feature batch stats
    #     (biased variance); all epilogue math in f32 (no bf16 VPU on v5e). ---
    mu = jnp.mean(emb, axis=0, keepdims=True)                    # (1, E)
    d = emb - mu
    var = jnp.mean(d * d, axis=0, keepdims=True)                 # (1, E)
    y = d * jax.lax.rsqrt(var + BN_EPS)
    # E < 128 means a masked vst here; negligible at (B, embed_size) size.
    out_ref[...] = (y * gamma_ref[...] + beta_ref[...]).astype(out_ref.dtype)


def encoder_cnn_head(feat_nchw, w_oi, bias, gamma, beta):
    """feat_nchw: (B, C, H, W) frozen ResNet feature map (f32);
    w_oi: (E, C) PyTorch Linear weight; bias/gamma/beta: (E,)."""
    B, C, H, W = feat_nchw.shape
    HW = H * W
    E = w_oi.shape[0]

    # Lane-dense layout: NCHW -> NHWC -> (B*HW, C); C (2048) lands on lanes.
    feat2d = (jnp.transpose(feat_nchw, (0, 2, 3, 1))
              .reshape(B * HW, C)
              .astype(jnp.bfloat16))
    w_io = jnp.transpose(w_oi).astype(jnp.bfloat16)              # (C, E)

    # Block-diagonal pooling matrix (f32 so 1/HW is not bf16-quantized).
    pool_mat = jnp.repeat(jnp.eye(B, dtype=jnp.float32), HW, axis=1) / float(HW)

    b2 = bias.reshape(1, E).astype(jnp.float32)
    g2 = gamma.reshape(1, E).astype(jnp.float32)
    bt2 = beta.reshape(1, E).astype(jnp.float32)

    # TODO(synk): at realistic batch sizes, tile the grid over B (budgeting the
    # tile against v7x's 64 MiB VMEM, not v5e/v6e's 128 MiB) and compute the BN
    # statistics with a two-pass / cross-grid-step accumulator; at these toy
    # shapes the whole problem (< 1 MB) fits in one VMEM-resident grid step.
    return pl.pallas_call(
        encoder_head_kernel,
        out_shape=jax.ShapeDtypeStruct((B, E), jnp.float32),
        grid=(1,),
        in_specs=[
            pl.BlockSpec((B * HW, C), lambda i: (0, 0)),
            pl.BlockSpec((C, E), lambda i: (0, 0)),
            pl.BlockSpec((B, B * HW), lambda i: (0, 0)),
            pl.BlockSpec((1, E), lambda i: (0, 0)),
            pl.BlockSpec((1, E), lambda i: (0, 0)),
            pl.BlockSpec((1, E), lambda i: (0, 0)),
        ],
        out_specs=pl.BlockSpec((B, E), lambda i: (0, 0)),
        compiler_params=pltpu.CompilerParams(
            dimension_semantics=("arbitrary",)),
    )(feat2d, w_io, pool_mat, b2, g2, bt2)


def reference(feat_nchw, w_oi, bias, gamma, beta):
    """Plain-JAX reference for the same head, on the same bf16-quantized
    feat / W the kernel consumes (f32 math everywhere else)."""
    B, C, H, W = feat_nchw.shape
    f = feat_nchw.astype(jnp.bfloat16).astype(jnp.float32)
    w = w_oi.astype(jnp.bfloat16).astype(jnp.float32)
    pooled = jnp.mean(f.reshape(B, C, H * W), axis=-1)           # avg-pool
    emb = pooled @ w.T + bias                                    # Linear
    mu = jnp.mean(emb, axis=0, keepdims=True)                    # BatchNorm1d
    var = jnp.mean((emb - mu) ** 2, axis=0, keepdims=True)
    return (emb - mu) / jnp.sqrt(var + BN_EPS) * gamma + beta


if __name__ == "__main__":
    # Shapes implied by the module: resnet50.fc.in_features == 2048; the last
    # conv stage emits (B, 2048, 7, 7) for a 224x224 image. Small batch/embed.
    B, C, H, W = 2, 2048, 7, 7
    embed_size = 32

    key = jax.random.PRNGKey(0)
    k_feat, k_w, k_b = jax.random.split(key, 3)

    # Stand-in for the frozen pretrained ResNet conv-stage output.
    feat = jax.random.normal(k_feat, (B, C, H, W), dtype=jnp.float32)

    # nn.Linear(2048, embed_size) default-style init (deterministic).
    bound = 1.0 / jnp.sqrt(jnp.float32(C))
    w = jax.random.uniform(k_w, (embed_size, C), jnp.float32, -bound, bound)
    b = jax.random.uniform(k_b, (embed_size,), jnp.float32, -bound, bound)

    # nn.BatchNorm1d init: gamma = 1, beta = 0.
    gamma = jnp.ones((embed_size,), jnp.float32)
    beta = jnp.zeros((embed_size,), jnp.float32)

    out = encoder_cnn_head(feat, w, b, gamma, beta)
    out = jax.block_until_ready(out)

    ref = reference(feat, w, b, gamma, beta)
    assert out.shape == (B, embed_size)
    assert jnp.allclose(out, ref, atol=1e-3, rtol=1e-3), "mismatch vs reference"

    print("KERNEL_OK")
</pallas_src>

<mosaic_0001>
module attributes {stable_mosaic.version = 11 : i64} {
  func.func @encoder_head_kernel(%arg0: i32, %arg1: memref<98x2048xbf16, #tpu.memory_space<vmem>>, %arg2: memref<2048x32xbf16, #tpu.memory_space<vmem>>, %arg3: memref<2x98xf32, #tpu.memory_space<vmem>>, %arg4: memref<1x32xf32, #tpu.memory_space<vmem>>, %arg5: memref<1x32xf32, #tpu.memory_space<vmem>>, %arg6: memref<1x32xf32, #tpu.memory_space<vmem>>, %arg7: memref<2x32xf32, #tpu.memory_space<vmem>>) attributes {dimension_semantics = [#tpu.dimension_semantics<arbitrary>], iteration_bounds = array<i64: 1>, scalar_prefetch = 0 : i64, scratch_operands = 0 : i64, tpu.core_type = #tpu.core_type<tc>, window_params = [{pipeline_mode = #tpu.pipeline_mode<synchronous>, transform_indices = @transform_0, window_bounds = array<i64: 98, 2048>}, {pipeline_mode = #tpu.pipeline_mode<synchronous>, transform_indices = @transform_1, window_bounds = array<i64: 2048, 32>}, {pipeline_mode = #tpu.pipeline_mode<synchronous>, transform_indices = @transform_2, window_bounds = array<i64: 2, 98>}, {pipeline_mode = #tpu.pipeline_mode<synchronous>, transform_indices = @transform_3, window_bounds = array<i64: 1, 32>}, {pipeline_mode = #tpu.pipeline_mode<synchronous>, transform_indices = @transform_4, window_bounds = array<i64: 1, 32>}, {pipeline_mode = #tpu.pipeline_mode<synchronous>, transform_indices = @transform_5, window_bounds = array<i64: 1, 32>}, {pipeline_mode = #tpu.pipeline_mode<synchronous>, transform_indices = @transform_6, window_bounds = array<i64: 2, 32>}]} {
    %c0 = arith.constant 0 : index
    %c0_0 = arith.constant 0 : index
    %0 = vector.load %arg1[%c0, %c0_0] : memref<98x2048xbf16, #tpu.memory_space<vmem>>, vector<98x2048xbf16>
    %c0_1 = arith.constant 0 : index
    %c0_2 = arith.constant 0 : index
    %1 = vector.load %arg2[%c0_1, %c0_2] : memref<2048x32xbf16, #tpu.memory_space<vmem>>, vector<2048x32xbf16>
    %cst = arith.constant dense<0.000000e+00> : vector<98x32xf32>
    %2 = tpu.matmul %0, %1, %cst {dimension_numbers = #tpu.dot_dimension_numbers<[1], [0], [0], [1], [0, 0, 1, 1], [], []>} : vector<98x2048xbf16>, vector<2048x32xbf16>, vector<98x32xf32> -> vector<98x32xf32>
    %c0_3 = arith.constant 0 : index
    %c0_4 = arith.constant 0 : index
    %3 = vector.load %arg3[%c0_3, %c0_4] : memref<2x98xf32, #tpu.memory_space<vmem>>, vector<2x98xf32>
    %cst_5 = arith.constant dense<0.000000e+00> : vector<2x32xf32>
    %4 = tpu.matmul %3, %2, %cst_5 {dimension_numbers = #tpu.dot_dimension_numbers<[1], [0], [0], [1], [0, 0, 1, 1], [], []>} : vector<2x98xf32>, vector<98x32xf32>, vector<2x32xf32> -> vector<2x32xf32>
    %c0_6 = arith.constant 0 : index
    %c0_7 = arith.constant 0 : index
    %5 = vector.load %arg4[%c0_6, %c0_7] : memref<1x32xf32, #tpu.memory_space<vmem>>, vector<1x32xf32>
    %6 = vector.broadcast %5 : vector<1x32xf32> to vector<2x32xf32>
    %7 = arith.addf %4, %6 : vector<2x32xf32>
    %cst_8 = arith.constant dense<0.000000e+00> : vector<32xf32>
    %8 = vector.multi_reduction <add>, %7, %cst_8 [0] : vector<2x32xf32> to vector<32xf32>
    %9 = vector.shape_cast %8 : vector<32xf32> to vector<1x32xf32>
    %cst_9 = arith.constant 2.000000e+00 : f32
    %10 = vector.broadcast %cst_9 : f32 to vector<1x32xf32>
    %11 = arith.divf %9, %10 : vector<1x32xf32>
    %12 = vector.broadcast %11 : vector<1x32xf32> to vector<2x32xf32>
    %13 = arith.subf %7, %12 : vector<2x32xf32>
    %14 = arith.mulf %13, %13 : vector<2x32xf32>
    %cst_10 = arith.constant dense<0.000000e+00> : vector<32xf32>
    %15 = vector.multi_reduction <add>, %14, %cst_10 [0] : vector<2x32xf32> to vector<32xf32>
    %16 = vector.shape_cast %15 : vector<32xf32> to vector<1x32xf32>
    %cst_11 = arith.constant 2.000000e+00 : f32
    %17 = vector.broadcast %cst_11 : f32 to vector<1x32xf32>
    %18 = arith.divf %16, %17 : vector<1x32xf32>
    %cst_12 = arith.constant 9.99999974E-6 : f32
    %19 = vector.broadcast %cst_12 : f32 to vector<1x32xf32>
    %20 = arith.addf %18, %19 : vector<1x32xf32>
    %21 = math.rsqrt %20 : vector<1x32xf32>
    %22 = vector.broadcast %21 : vector<1x32xf32> to vector<2x32xf32>
    %23 = arith.mulf %13, %22 : vector<2x32xf32>
    %c0_13 = arith.constant 0 : index
    %c0_14 = arith.constant 0 : index
    %24 = vector.load %arg5[%c0_13, %c0_14] : memref<1x32xf32, #tpu.memory_space<vmem>>, vector<1x32xf32>
    %25 = vector.broadcast %24 : vector<1x32xf32> to vector<2x32xf32>
    %26 = arith.mulf %23, %25 : vector<2x32xf32>
    %c0_15 = arith.constant 0 : index
    %c0_16 = arith.constant 0 : index
    %27 = vector.load %arg6[%c0_15, %c0_16] : memref<1x32xf32, #tpu.memory_space<vmem>>, vector<1x32xf32>
    %28 = vector.broadcast %27 : vector<1x32xf32> to vector<2x32xf32>
    %29 = arith.addf %26, %28 : vector<2x32xf32>
    %c0_17 = arith.constant 0 : index
    %c0_18 = arith.constant 0 : index
    %30 = vector.load %arg7[%c0_17, %c0_18] : memref<2x32xf32, #tpu.memory_space<vmem>>, vector<2x32xf32>
    tpu.vector_store %arg7[%c0_17, %c0_18], %29 {strides = array<i32>} : memref<2x32xf32, #tpu.memory_space<vmem>>, vector<2x32xf32>,
    return
  }
  func.func @transform_0(%arg0: i32) -> (i32, i32) {
    %c0_i32 = arith.constant 0 : i32
    %c0_i32_0 = arith.constant 0 : i32
    %c0_i32_1 = arith.constant 0 : i32
    return %c0_i32, %c0_i32_0 : i32, i32
  }
  func.func @transform_1(%arg0: i32) -> (i32, i32) {
    %c0_i32 = arith.constant 0 : i32
    %c0_i32_0 = arith.constant 0 : i32
    %c0_i32_1 = arith.constant 0 : i32
    return %c0_i32, %c0_i32_0 : i32, i32
  }
  func.func @transform_2(%arg0: i32) -> (i32, i32) {
    %c0_i32 = arith.constant 0 : i32
    %c0_i32_0 = arith.constant 0 : i32
    %c0_i32_1 = arith.constant 0 : i32
    return %c0_i32, %c0_i32_0 : i32, i32
  }
  func.func @transform_3(%arg0: i32) -> (i32, i32) {
    %c0_i32 = arith.constant 0 : i32
    %c0_i32_0 = arith.constant 0 : i32
    %c0_i32_1 = arith.constant 0 : i32
    return %c0_i32, %c0_i32_0 : i32, i32
  }
  func.func @transform_4(%arg0: i32) -> (i32, i32) {
    %c0_i32 = arith.constant 0 : i32
    %c0_i32_0 = arith.constant 0 : i32
    %c0_i32_1 = arith.constant 0 : i32
    return %c0_i32, %c0_i32_0 : i32, i32
  }
  func.func @transform_5(%arg0: i32) -> (i32, i32) {
    %c0_i32 = arith.constant 0 : i32
    %c0_i32_0 = arith.constant 0 : i32
    %c0_i32_1 = arith.constant 0 : i32
    return %c0_i32, %c0_i32_0 : i32, i32
  }
  func.func @transform_6(%arg0: i32) -> (i32, i32) {
    %c0_i32 = arith.constant 0 : i32
    %c0_i32_0 = arith.constant 0 : i32
    %c0_i32_1 = arith.constant 0 : i32
    return %c0_i32, %c0_i32_0 : i32, i32
  }
}

</mosaic_0001>

<bundles_post_ra>
// kernel: tpu_custom_call.1
= control target key start
LH: loop header
LB: loop body
LE: loop exit
PB: predicated region body
PF: predicated region fallthrough
CT: control target
= control target key end

     0   :  { %s4414_s0 = inlined_call_operand.vmem [shape: bf16[98,2048], index: 0, kind: input, shape index: {}]   ;;  %s4415_s1 = inlined_call_operand.vmem [shape: bf16[2048,32], index: 1, kind: input, shape index: {}]   ;;  %s4416_s2 = inlined_call_operand.vmem [shape: f32[2,98], index: 2, kind: input, shape index: {}]   ;;  %s4417_s3 = inlined_call_operand.vmem [shape: f32[1,32], index: 3, kind: input, shape index: {}]   ;;  %s4418_s4 = inlined_call_operand.vmem [shape: f32[1,32], index: 4, kind: input, shape index: {}]   ;;  %s4419_s5 = inlined_call_operand.vmem [shape: f32[1,32], index: 5, kind: input, shape index: {}]   ;;  %s4420_s6 = inlined_call_operand.hbm [shape: f32[2,32], index: 6, kind: output, shape index: {}]  }
   0x1   :  { %v3288_v0 = vld [vmem:[%s4415_s1 + $0x78] sm:$0xff]   ;;  %v3292_v4 = vld [vmem:[%s4415_s1 + $0x70] sm:$0xff]   ;;  %v3296_v8 = vld [vmem:[%s4415_s1 + $0x68] sm:$0xff]  }
   0x2   :  { %v3289_v1 = vld [vmem:[%s4415_s1 + $0xf8] sm:$0xff]   ;;  %2778 = vmatprep.subr.bf16.mxu0 %v3288_v0  ;;  %v3293_v5 = vld [vmem:[%s4415_s1 + $0xf0] sm:$0xff]   ;;  %v3297_v9 = vld [vmem:[%s4415_s1 + $0xe8] sm:$0xff]  }
   0x3   :  { %v3290_v2 = vld [vmem:[%s4415_s1 + $0x38] sm:$0xff]   ;;  %2836 = vmatprep.subr.bf16.mxu1 %v3289_v1  ;;  %v3294_v6 = vld [vmem:[%s4415_s1 + $0x30] sm:$0xff]   ;;  %v3298_v10 = vld [vmem:[%s4415_s1 + $0x28] sm:$0xff]  }
   0x4   :  { %v3291_v3 = vld [vmem:[%s4415_s1 + $0xb8] sm:$0xff]   ;;  %2779 = vmatpush3.bf16.msra.mxu0 %v3290_v2  ;;  %v3295_v7 = vld [vmem:[%s4415_s1 + $0xb0] sm:$0xff]   ;;  %v3299_v11 = vld [vmem:[%s4415_s1 + $0xa8] sm:$0xff]  }
   0x5   :  { %2837 = vmatpush3.bf16.msra.mxu1 %v3291_v3  ;;  %2780 = vmatprep.subr.bf16.mxu0 %v3292_v4  ;;  %v3300_v12 = vld [vmem:[%s4415_s1 + $0x60] sm:$0xff]   ;;  %v3304_v16 = vld [vmem:[%s4415_s1 + $0x58] sm:$0xff]   ;;  %v3308_v20 = vld [vmem:[%s4415_s1 + $0x50] sm:$0xff]  }
   0x6   :  { %2838 = vmatprep.subr.bf16.mxu1 %v3293_v5  ;;  %v3301_v13 = vld [vmem:[%s4415_s1 + $0xe0] sm:$0xff]   ;;  %v3305_v17 = vld [vmem:[%s4415_s1 + $0xd8] sm:$0xff]   ;;  %v3309_v21 = vld [vmem:[%s4415_s1 + $0xd0] sm:$0xff]  }
   0x7   :  { %v3302_v14 = vld [vmem:[%s4415_s1 + $0x20] sm:$0xff]   ;;  %v3306_v18 = vld [vmem:[%s4415_s1 + $0x18] sm:$0xff]   ;;  %v3310_v22 = vld [vmem:[%s4415_s1 + $0x10] sm:$0xff]  }
   0x8   :  { %2781 = vmatpush3.bf16.msra.mxu0 %v3294_v6  ;;  %v3303_v15 = vld [vmem:[%s4415_s1 + $0xa0] sm:$0xff]   ;;  %v3307_v19 = vld [vmem:[%s4415_s1 + $0x98] sm:$0xff]   ;;  %v3311_v23 = vld [vmem:[%s4415_s1 + $0x90] sm:$0xff]  }
   0x9   :  { %2839 = vmatpush3.bf16.msra.mxu1 %v3295_v7  ;;  %2782 = vmatprep.subr.bf16.mxu0 %v3296_v8  ;;  %v3312_v24 = vld [vmem:[%s4415_s1 + $0x48] sm:$0xff]   ;;  %v3316_v28 = vld [vmem:[%s4415_s1 + $0x40] sm:$0xff]   ;;  %v3320_v50 = vld [vmem:[%s4415_s1 + $0x178] sm:$0xff]  }
   0xa   :  { %2840 = vmatprep.subr.bf16.mxu1 %v3297_v9  ;;  %v3313_v25 = vld [vmem:[%s4415_s1 + $0xc8] sm:$0xff]   ;;  %v3317_v29 = vld [vmem:[%s4415_s1 + $0xc0] sm:$0xff]   ;;  %v3321_v51 = vld [vmem:[%s4415_s1 + $0x1f8] sm:$0xff]  }
   0xb   :  { %v3314_v26 = vld [vmem:[%s4415_s1 + $0x8] sm:$0xff]   ;;  %v3318_v30 = vld [vmem:[%s4415_s1] sm:$0xff]   ;;  %v3322_v53 = vld [vmem:[%s4415_s1 + $0x138] sm:$0xff]  }
   0xc   :  { %2783 = vmatpush3.bf16.msra.mxu0 %v3298_v10  ;;  %v3315_v27 = vld [vmem:[%s4415_s1 + $0x88] sm:$0xff]   ;;  %v3319_v31 = vld [vmem:[%s4415_s1 + $0x80] sm:$0xff]   ;;  %v3323_v56 = vld [vmem:[%s4415_s1 + $0x1b8] sm:$0xff]  }
   0xd   :  { %2841 = vmatpush3.bf16.msra.mxu1 %v3299_v11  ;;  %2784 = vmatprep.subr.bf16.mxu0 %v3300_v12  ;;  %v25_v32 = vld [vmem:[%s4414_s0] sm:$0xff]  ;;  %v26_v34 = vld [vmem:[%s4414_s0 + $0x8] sm:$0xff]  ;;  %v3324_v58 = vld [vmem:[%s4415_s1 + $0x170] sm:$0xff]  }
   0xe   :  { %2842 = vmatprep.subr.bf16.mxu1 %v3301_v13  ;;  %v33_v33 = vld [vmem:[%s4414_s0 + $0x40] sm:$0xff]  ;;  %v34_v37 = vld [vmem:[%s4414_s0 + $0x48] sm:$0xff]  ;;  %v3325_v59 = vld [vmem:[%s4415_s1 + $0x1f0] sm:$0xff]  }
   0xf   :  { %v2533_v35 = vcombine.low %v25_v32, %v33_v33  ;;  %v2534_v36 = vcombine.high %v25_v32, %v33_v33  ;;  %v41_v38 = vld [vmem:[%s4414_s0 + $0x80] sm:$0xff]  ;;  %v2535_v40 = vcombine.low %v26_v34, %v34_v37  ;;  %v2536_v41 = vcombine.high %v26_v34, %v34_v37  ;;  %v42_v43 = vld [vmem:[%s4414_s0 + $0x88] sm:$0xff]  ;;  %v3326_v60 = vld [vmem:[%s4415_s1 + $0x130] sm:$0xff]  }
  0x10   :  { %2785 = vmatpush3.bf16.msra.mxu0 %v3302_v14  ;;  %v49_v39 = vld [vmem:[%s4414_s0 + $0xc0] sm:$0xff]  ;;  %v50_v44 = vld [vmem:[%s4414_s0 + $0xc8] sm:$0xff]  ;;  %v3327_v63 = vld [vmem:[%s4415_s1 + $0x1b0] sm:$0xff]  }
  0x11   :  { %2843 = vmatpush3.bf16.msra.mxu1 %v3303_v15  ;;  %2786 = vmatprep.subr.bf16.mxu0 %v3304_v16  ;;  %v2550_v42 = vcombine.high %v41_v38, %v49_v39  ;;  %v2552_v45 = vcombine.high %v42_v43, %v50_v44  ;;  %v57_v46 = vld [vmem:[%s4414_s0 + $0x100] sm:$0xff]  ;;  %v58_v48 = vld [vmem:[%s4414_s0 + $0x108] sm:$0xff]  ;;  %v2549_v52 = vcombine.low %v41_v38, %v49_v39  ;;  %v3342_v32 = vld [vmem:[%s4415_s1 + $0x110] sm:$0xff]  }
  0x12   :  { %2844 = vmatprep.subr.bf16.mxu1 %v3305_v17  ;;  %1721 = vmatprep.mubr.bf16.mxu0 %v2534_v36  ;;  %v65_v47 = vld [vmem:[%s4414_s0 + $0x140] sm:$0xff]  ;;  %v66_v49 = vld [vmem:[%s4414_s0 + $0x148] sm:$0xff]  ;;  %v2551_v54 = vcombine.low %v42_v43, %v50_v44  ;;  %v3343_v33 = vld [vmem:[%s4415_s1 + $0x190] sm:$0xff]  }
  0x13   :  { %1809 = vmatprep.mubr.bf16.mxu1 %v2536_v41  ;;  %v2566_v55 = vcombine.high %v57_v46, %v65_v47  ;;  %v2568_v57 = vcombine.high %v58_v48, %v66_v49  ;;  %v73_v61 = vld [vmem:[%s4414_s0 + $0x180] sm:$0xff]  ;;  %v74_v0 = vld [vmem:[%s4414_s0 + $0x188] sm:$0xff]  ;;  %v2565_v3 = vcombine.low %v57_v46, %v65_v47  ;;  %v2567_v5 = vcombine.low %v58_v48, %v66_v49 }
  0x14   :  { %2787 = vmatpush3.bf16.msra.mxu0 %v3306_v18  ;;  %v81_v62 = vld [vmem:[%s4414_s0 + $0x1c0] sm:$0xff]  ;;  %v82_v1 = vld [vmem:[%s4414_s0 + $0x1c8] sm:$0xff] }
  0x15   :  { %2845 = vmatpush3.bf16.msra.mxu1 %v3307_v19  ;;  %2788 = vmatprep.subr.bf16.mxu0 %v3308_v20  ;;  %v3328_v2 = vld [vmem:[%s4415_s1 + $0x168] sm:$0xff]   ;;  %v2582_v6 = vcombine.high %v73_v61, %v81_v62  ;;  %v2584_v8 = vcombine.high %v74_v0, %v82_v1  ;;  %v3332_v10 = vld [vmem:[%s4415_s1 + $0x160] sm:$0xff]   ;;  %v2581_v18 = vcombine.low %v73_v61, %v81_v62  ;;  %v3336_v19 = vld [vmem:[%s4415_s1 + $0x158] sm:$0xff]  }
  0x16   :  { %2846 = vmatprep.subr.bf16.mxu1 %v3309_v21  ;;  %v3329_v4 = vld [vmem:[%s4415_s1 + $0x1e8] sm:$0xff]   ;;  %v89_v11 = vld [vmem:[%s4414_s0 + $0x200] sm:$0xff]  ;;  %v2583_v20 = vcombine.low %v74_v0, %v82_v1  ;;  %v43_v62 = vld [vmem:[%s4414_s0 + $0x90] sm:$0xff] }
  0x17   :  { %v3330_v7 = vld [vmem:[%s4415_s1 + $0x128] sm:$0xff]   ;;  %v3333_v12 = vld [vmem:[%s4415_s1 + $0x1e0] sm:$0xff]   ;;  %v44_v0 = vld [vmem:[%s4414_s0 + $0x98] sm:$0xff] }
  0x18   :  { %2789 = vmatpush3.bf16.msra.mxu0 %v3310_v22  ;;  %v3331_v9 = vld [vmem:[%s4415_s1 + $0x1a8] sm:$0xff]   ;;  %v3334_v13 = vld [vmem:[%s4415_s1 + $0x120] sm:$0xff]   ;;  %v3337_v22 = vld [vmem:[%s4415_s1 + $0x1d8] sm:$0xff]  }
  0x19   :  { %2847 = vmatpush3.bf16.msra.mxu1 %v3311_v23  ;;  %2790 = vmatprep.subr.bf16.mxu0 %v3312_v24  ;;  %v97_v14 = vld [vmem:[%s4414_s0 + $0x240] sm:$0xff]  ;;  %v90_v16 = vld [vmem:[%s4414_s0 + $0x208] sm:$0xff]  ;;  %v3338_v24 = vld [vmem:[%s4415_s1 + $0x118] sm:$0xff]  }
  0x1a   :  { %2848 = vmatprep.subr.bf16.mxu1 %v3313_v25  ;;  %v3335_v15 = vld [vmem:[%s4415_s1 + $0x1a0] sm:$0xff]   ;;  %v98_v17 = vld [vmem:[%s4414_s0 + $0x248] sm:$0xff]  ;;  %v2598_v21 = vcombine.high %v89_v11, %v97_v14  ;;  %v3339_v25 = vld [vmem:[%s4415_s1 + $0x198] sm:$0xff]   ;;  %v2597_v34 = vcombine.low %v89_v11, %v97_v14 }
  0x1b   :  { %v2600_v23 = vcombine.high %v90_v16, %v98_v17  ;;  %v3348_v37 = vld [vmem:[%s4415_s1 + $0x148] sm:$0xff]   ;;  %v121_v41 = vld [vmem:[%s4414_s0 + $0x300] sm:$0x11]  ;;  %v52_v1 = vld [vmem:[%s4414_s0 + $0xd8] sm:$0xff] }
  0x1c   :  { %2791 = vmatpush3.bf16.msra.mxu0 %v3314_v26  ;;  %v105_v26 = vld [vmem:[%s4414_s0 + $0x280] sm:$0xff]  ;;  %v3349_v39 = vld [vmem:[%s4415_s1 + $0x1c8] sm:$0xff]   ;;  %v3361_v11 = vld [vmem:[%s4415_s1 + $0x2f0] sm:$0xff]  }
  0x1d   :  { %2849 = vmatpush3.bf16.msra.mxu1 %v3315_v27  ;;  %2792 = vmatprep.subr.bf16.mxu0 %v3316_v28  ;;  %v113_v27 = vld [vmem:[%s4414_s0 + $0x2c0] sm:$0xff]  ;;  %v3340_v28 = vld [vmem:[%s4415_s1 + $0x150] sm:$0xff]   ;;  %v122_v43 = vld [vmem:[%s4414_s0 + $0x308] sm:$0x11] }
  0x1e   :  { %2850 = vmatprep.subr.bf16.mxu1 %v3317_v29  ;;  %v106_v29 = vld [vmem:[%s4414_s0 + $0x288] sm:$0xff]  ;;  %v2614_v36 = vcombine.high %v105_v26, %v113_v27  ;;  %v3352_v44 = vld [vmem:[%s4415_s1 + $0x140] sm:$0xff]   ;;  %v2613_v47 = vcombine.low %v105_v26, %v113_v27  ;;  %v68_v14 = vld [vmem:[%s4414_s0 + $0x158] sm:$0xff] }
  0x1f   :  { %v3354_v46 = vld [vmem:[%s4415_s1 + $0x100] sm:$0xff]   ;;  %v83_v26 = vld [vmem:[%s4414_s0 + $0x1d0] sm:$0xff] }
  0x20   :  { %2793 = vmatpush3.bf16.msra.mxu0 %v3318_v30  ;;  %v114_v30 = vld [vmem:[%s4414_s0 + $0x2c8] sm:$0xff]  ;;  %v3355_v48 = vld [vmem:[%s4415_s1 + $0x180] sm:$0xff]  }
  0x21   :  { %2851 = vmatpush3.bf16.msra.mxu1 %v3319_v31  ;;  %2894 = vmatprep.subr.bf16.mxu0 %v3320_v50  ;;  %v3341_v31 = vld [vmem:[%s4415_s1 + $0x1d0] sm:$0xff]   ;;  %v2616_v38 = vcombine.high %v106_v29, %v114_v30  ;;  %v2615_v49 = vcombine.low %v106_v29, %v114_v30  ;;  %v2630_v50 = vcombine.high %v121_v41, %v121_v41  ;;  %v3369_v27 = vld [vmem:[%s4415_s1 + $0x2e0] sm:$0xff]   ;;  %v84_v29 = vld [vmem:[%s4414_s0 + $0x1d8] sm:$0xff] }
  0x22   :  { %2952 = vmatprep.subr.bf16.mxu1 %v3321_v51  ;;  %v2632_v51 = vcombine.high %v122_v43, %v122_v43  ;;  %v3370_v30 = vld [vmem:[%s4415_s1 + $0x220] sm:$0xff]  }
  0x23   :  { %1722 = vmatmul.mubr.bf16.vlgmr.msra.gmra.mxu0 %v2533_v35  ;;  %v2599_v35 = vcombine.low %v90_v16, %v98_v17  ;;  %v3364_v16 = vld [vmem:[%s4415_s1 + $0x268] sm:$0xff]  }
  0x24   :  { %1810 = vmatmul.mubr.bf16.vlgmr.msra.gmra.mxu1 %v2535_v40  ;;  %1729 = vmatprep.mubr.bf16.mxu0 %v2550_v42  ;;  %v3350_v40 = vld [vmem:[%s4415_s1 + $0x108] sm:$0xff]  }
  0x25   :  { %1817 = vmatprep.mubr.bf16.mxu1 %v2552_v45  ;;  %2895 = vmatpush3.bf16.msra.mxu0 %v3322_v53  ;;  %v3351_v42 = vld [vmem:[%s4415_s1 + $0x188] sm:$0xff]   ;;  %v3353_v45 = vld [vmem:[%s4415_s1 + $0x1c0] sm:$0xff]   ;;  %v35_v53 = vld [vmem:[%s4414_s0 + $0x50] sm:$0xff] }
  0x26   :  { %2953 = vmatpush3.bf16.msra.mxu1 %v3323_v56  ;;  %2896 = vmatprep.subr.bf16.mxu0 %v3324_v58  ;;  %v3356_v56 = vld [vmem:[%s4415_s1 + $0x278] sm:$0xff]   ;;  %v2629_v58 = vcombine.low %v121_v41, %v121_v41  ;;  %v91_v41 = vld [vmem:[%s4414_s0 + $0x210] sm:$0xff] }
  0x27   :  { %2954 = vmatprep.subr.bf16.mxu1 %v3325_v59  ;;  %v2631_v59 = vcombine.low %v122_v43, %v122_v43  ;;  %v3377_v43 = vld [vmem:[%s4415_s1 + $0x2d0] sm:$0xff]  }
  0x29   :  { %2897 = vmatpush3.bf16.msra.mxu0 %v3326_v60 }
  0x2a   :  { %2955 = vmatpush3.bf16.msra.mxu1 %v3327_v63  ;;  %2898 = vmatprep.subr.bf16.mxu0 %v3328_v2  ;;  %v51_v63 = vld [vmem:[%s4414_s0 + $0xd0] sm:$0xff] }
  0x2b   :  { %1730 = vmatmul.mubr.bf16.gmra.mxu0 %v2549_v52  ;;  %2956 = vmatprep.subr.bf16.mxu1 %v3329_v4  ;;  %v27_v52 = vld [vmem:[%s4414_s0 + $0x10] sm:$0xff]  ;;  %v2554_v4 = vcombine.high %v43_v62, %v51_v63  ;;  %v2553_v17 = vcombine.low %v43_v62, %v51_v63  ;;  %v3390_v62 = vld [vmem:[%s4415_s1 + $0x200] sm:$0xff]  }
  0x2c   :  { %1818 = vmatmul.mubr.bf16.gmra.mxu1 %v2551_v54  ;;  %1737 = vmatprep.mubr.bf16.mxu0 %v2566_v55  ;;  %v28_v54 = vld [vmem:[%s4414_s0 + $0x18] sm:$0xff]  ;;  %v2538_v60 = vcombine.high %v27_v52, %v35_v53  ;;  %v2537_v2 = vcombine.low %v27_v52, %v35_v53  ;;  %v3391_v63 = vld [vmem:[%s4415_s1 + $0x280] sm:$0xff]  }
  0x2d   :  { %1825 = vmatprep.mubr.bf16.mxu1 %v2568_v57  ;;  %2899 = vmatpush3.bf16.msra.mxu0 %v3330_v7  ;;  %v36_v55 = vld [vmem:[%s4414_s0 + $0x58] sm:$0xff] }
  0x2e   :  { %2957 = vmatpush3.bf16.msra.mxu1 %v3331_v9  ;;  %2900 = vmatprep.subr.bf16.mxu0 %v3332_v10  ;;  %v3357_v57 = vld [vmem:[%s4415_s1 + $0x2f8] sm:$0xff]   ;;  %v2540_v61 = vcombine.high %v28_v54, %v36_v55  ;;  %v59_v9 = vld [vmem:[%s4414_s0 + $0x110] sm:$0xff] }
  0x2f   :  { %2958 = vmatprep.subr.bf16.mxu1 %v3333_v12  ;;  %v3359_v7 = vld [vmem:[%s4415_s1 + $0x2b8] sm:$0xff]   ;;  %v67_v10 = vld [vmem:[%s4414_s0 + $0x150] sm:$0xff] }
  0x30   :  { %v60_v12 = vld [vmem:[%s4414_s0 + $0x118] sm:$0xff] }
  0x31   :  { %2901 = vmatpush3.bf16.msra.mxu0 %v3334_v13  ;;  %v3362_v13 = vld [vmem:[%s4415_s1 + $0x230] sm:$0xff]  }
  0x32   :  { %2959 = vmatpush3.bf16.msra.mxu1 %v3335_v15  ;;  %2902 = vmatprep.subr.bf16.mxu0 %v3336_v19  ;;  %v3363_v15 = vld [vmem:[%s4415_s1 + $0x2b0] sm:$0xff]   ;;  %v2555_v19 = vcombine.low %v44_v0, %v52_v1 }
  0x33   :  { %1738 = vmatmul.mubr.bf16.gmra.mxu0 %v2565_v3  ;;  %2960 = vmatprep.subr.bf16.mxu1 %v3337_v22  ;;  %v2539_v3 = vcombine.low %v28_v54, %v36_v55  ;;  %v2572_v22 = vcombine.high %v60_v12, %v68_v14  ;;  %v3386_v54 = vld [vmem:[%s4415_s1 + $0x208] sm:$0xff]  }
  0x34   :  { %1826 = vmatmul.mubr.bf16.gmra.mxu1 %v2567_v5  ;;  %1745 = vmatprep.mubr.bf16.mxu0 %v2582_v6  ;;  %v3358_v5 = vld [vmem:[%s4415_s1 + $0x238] sm:$0xff]   ;;  %v2556_v6 = vcombine.high %v44_v0, %v52_v1  ;;  %v3387_v55 = vld [vmem:[%s4415_s1 + $0x288] sm:$0xff]  }
  0x35   :  { %1833 = vmatprep.mubr.bf16.mxu1 %v2584_v8  ;;  %2903 = vmatpush3.bf16.msra.mxu0 %v3338_v24  ;;  %v3360_v8 = vld [vmem:[%s4415_s1 + $0x270] sm:$0xff]   ;;  %v3368_v24 = vld [vmem:[%s4415_s1 + $0x260] sm:$0xff]   ;;  %v3392_v0 = vld [vmem:[%s4415_s1 + $0x378] sm:$0xff]  }
  0x36   :  { %2961 = vmatpush3.bf16.msra.mxu1 %v3339_v25  ;;  %2904 = vmatprep.subr.bf16.mxu0 %v3340_v28  ;;  %v75_v25 = vld [vmem:[%s4414_s0 + $0x190] sm:$0xff]  ;;  %v76_v28 = vld [vmem:[%s4414_s0 + $0x198] sm:$0xff] }
  0x37   :  { %2962 = vmatprep.subr.bf16.mxu1 %v3341_v31  ;;  %v3371_v31 = vld [vmem:[%s4415_s1 + $0x2a0] sm:$0xff]  }
  0x39   :  { %2905 = vmatpush3.bf16.msra.mxu0 %v3342_v32  ;;  %v3372_v32 = vld [vmem:[%s4415_s1 + $0x258] sm:$0xff]  }
  0x3a   :  { %2963 = vmatpush3.bf16.msra.mxu1 %v3343_v33  ;;  %2906 = vmatprep.subr.bf16.mxu0 %v3348_v37  ;;  %v2569_v33 = vcombine.low %v59_v9, %v67_v10  ;;  %v3374_v37 = vld [vmem:[%s4415_s1 + $0x218] sm:$0xff]  }
  0x3b   :  { %1746 = vmatmul.mubr.bf16.gmra.mxu0 %v2581_v18  ;;  %2964 = vmatprep.subr.bf16.mxu1 %v3349_v39  ;;  %v3365_v18 = vld [vmem:[%s4415_s1 + $0x2e8] sm:$0xff]   ;;  %v3375_v39 = vld [vmem:[%s4415_s1 + $0x298] sm:$0xff]  }
  0x3c   :  { %1834 = vmatmul.mubr.bf16.gmra.mxu1 %v2583_v20  ;;  %1753 = vmatprep.mubr.bf16.mxu0 %v2598_v21  ;;  %v2570_v20 = vcombine.high %v59_v9, %v67_v10  ;;  %v3366_v21 = vld [vmem:[%s4415_s1 + $0x228] sm:$0xff]  }
  0x3d   :  { %1841 = vmatprep.mubr.bf16.mxu1 %v2600_v23  ;;  %2907 = vmatpush3.bf16.msra.mxu0 %v3350_v40  ;;  %v3367_v23 = vld [vmem:[%s4415_s1 + $0x2a8] sm:$0xff]   ;;  %v3376_v40 = vld [vmem:[%s4415_s1 + $0x250] sm:$0xff]  }
  0x3e   :  { %2965 = vmatpush3.bf16.msra.mxu1 %v3351_v42  ;;  %2908 = vmatprep.subr.bf16.mxu0 %v3352_v44  ;;  %v99_v42 = vld [vmem:[%s4414_s0 + $0x250] sm:$0xff]  ;;  %v92_v44 = vld [vmem:[%s4414_s0 + $0x218] sm:$0xff] }
  0x3f   :  { %2966 = vmatprep.subr.bf16.mxu1 %v3353_v45  ;;  %v100_v45 = vld [vmem:[%s4414_s0 + $0x258] sm:$0xff]  ;;  %v2602_v52 = vcombine.high %v91_v41, %v99_v42  ;;  %v2601_v1 = vcombine.low %v91_v41, %v99_v42 }
  0x40   :  { %v2604_v53 = vcombine.high %v92_v44, %v100_v45 }
  0x41   :  { %2909 = vmatpush3.bf16.msra.mxu0 %v3354_v46  ;;  %v3378_v46 = vld [vmem:[%s4415_s1 + $0x210] sm:$0xff]  }
  0x42   :  { %2967 = vmatpush3.bf16.msra.mxu1 %v3355_v48  ;;  %3010 = vmatprep.subr.bf16.mxu0 %v3356_v56  ;;  %v3384_v48 = vld [vmem:[%s4415_s1 + $0x248] sm:$0xff]   ;;  %v3388_v56 = vld [vmem:[%s4415_s1 + $0x240] sm:$0xff]  }
  0x43   :  { %1754 = vmatmul.mubr.bf16.gmra.mxu0 %v2597_v34  ;;  %3068 = vmatprep.subr.bf16.mxu1 %v3357_v57  ;;  %v3373_v34 = vld [vmem:[%s4415_s1 + $0x2d8] sm:$0xff]   ;;  %v107_v57 = vld [vmem:[%s4414_s0 + $0x290] sm:$0xff] }
  0x44   :  { %1842 = vmatmul.mubr.bf16.gmra.mxu1 %v2599_v35  ;;  %1761 = vmatprep.mubr.bf16.mxu0 %v2614_v36  ;;  %v2571_v35 = vcombine.low %v60_v12, %v68_v14  ;;  %v2586_v36 = vcombine.high %v75_v25, %v83_v26  ;;  %v29_v12 = vld [vmem:[%s4414_s0 + $0x20] sm:$0xff]  ;;  %v30_v14 = vld [vmem:[%s4414_s0 + $0x28] sm:$0xff] }
  0x45   :  { %1849 = vmatprep.mubr.bf16.mxu1 %v2616_v38  ;;  %v2588_v38 = vcombine.high %v76_v28, %v84_v29 }
  0x4b   :  { %1762 = vmatmul.mubr.bf16.gmra.mxu0 %v2613_v47  ;;  %v3379_v47 = vld [vmem:[%s4415_s1 + $0x290] sm:$0xff]  }
  0x4c   :  { %1850 = vmatmul.mubr.bf16.gmra.mxu1 %v2615_v49  ;;  %1769 = vmatprep.mubr.bf16.mxu0 %v2630_v50  ;;  %v2585_v49 = vcombine.low %v75_v25, %v83_v26  ;;  %v3385_v50 = vld [vmem:[%s4415_s1 + $0x2c8] sm:$0xff]  }
  0x4d   :  { %1857 = vmatprep.mubr.bf16.mxu1 %v2632_v51  ;;  %v2587_v51 = vcombine.low %v76_v28, %v84_v29  ;;  %v3395_v29 = vld [vmem:[%s4415_s1 + $0x3b8] sm:$0xff]  }
  0x53   :  { %1770 = vmatmul.mubr.bf16.gmra.mxu0 %v2629_v58  ;;  %v3389_v58 = vld [vmem:[%s4415_s1 + $0x2c0] sm:$0xff]  }
  0x54   :  { %1858 = vmatmul.mubr.bf16.gmra.mxu1 %v2631_v59  ;;  %1897 = vmatprep.mubr.bf16.mxu0 %v2538_v60  ;;  %v115_v59 = vld [vmem:[%s4414_s0 + $0x2d0] sm:$0xff]  ;;  %v108_v60 = vld [vmem:[%s4414_s0 + $0x298] sm:$0xff] }
  0x55   :  { %1985 = vmatprep.mubr.bf16.mxu1 %v2540_v61  ;;  %v116_v61 = vld [vmem:[%s4414_s0 + $0x2d8] sm:$0xff] }
  0x56   :  { %v2619_v9 = vcombine.low %v108_v60, %v116_v61 }
  0x5b   :  { %1898 = vmatmul.mubr.bf16.vlgmr.msra.gmra.mxu0 %v2537_v2  ;;  %v3393_v2 = vld [vmem:[%s4415_s1 + $0x3f8] sm:$0xff]  }
  0x5c   :  { %1986 = vmatmul.mubr.bf16.vlgmr.msra.gmra.mxu1 %v2539_v3  ;;  %1905 = vmatprep.mubr.bf16.mxu0 %v2554_v4  ;;  %v2603_v3 = vcombine.low %v92_v44, %v100_v45  ;;  %v2618_v4 = vcombine.high %v107_v57, %v115_v59  ;;  %v3402_v44 = vld [vmem:[%s4415_s1 + $0x328] sm:$0xff]  }
  0x5d   :  { %1993 = vmatprep.mubr.bf16.mxu1 %v2556_v6  ;;  %3011 = vmatpush3.bf16.msra.mxu0 %v3358_v5  ;;  %v2620_v5 = vcombine.high %v108_v60, %v116_v61  ;;  %v123_v6 = vld [vmem:[%s4414_s0 + $0x310] sm:$0x11]  ;;  %v3403_v45 = vld [vmem:[%s4415_s1 + $0x3a8] sm:$0xff]   ;;  %v3410_v60 = vld [vmem:[%s4415_s1 + $0x318] sm:$0xff]  }
  0x5e   :  { %3069 = vmatpush3.bf16.msra.mxu1 %v3359_v7  ;;  %3012 = vmatprep.subr.bf16.mxu0 %v3360_v8  ;;  %v124_v7 = vld [vmem:[%s4414_s0 + $0x318] sm:$0x11]  ;;  %v2617_v8 = vcombine.low %v107_v57, %v115_v59  ;;  %v2634_v10 = vcombine.high %v123_v6, %v123_v6 }
  0x5f   :  { %3070 = vmatprep.subr.bf16.mxu1 %v3361_v11  ;;  %v2636_v11 = vcombine.high %v124_v7, %v124_v7 }
  0x61   :  { %3013 = vmatpush3.bf16.msra.mxu0 %v3362_v13  ;;  %v37_v13 = vld [vmem:[%s4414_s0 + $0x60] sm:$0xff] }
  0x62   :  { %3071 = vmatpush3.bf16.msra.mxu1 %v3363_v15  ;;  %3014 = vmatprep.subr.bf16.mxu0 %v3364_v16  ;;  %v38_v15 = vld [vmem:[%s4414_s0 + $0x68] sm:$0xff]  ;;  %v2633_v16 = vcombine.low %v123_v6, %v123_v6 }
  0x63   :  { %1906 = vmatmul.mubr.bf16.gmra.mxu0 %v2553_v17  ;;  %3072 = vmatprep.subr.bf16.mxu1 %v3365_v18  ;;  %v2635_v17 = vcombine.low %v124_v7, %v124_v7  ;;  %v2542_v18 = vcombine.high %v29_v12, %v37_v13  ;;  %v2543_v25 = vcombine.low %v30_v14, %v38_v15 }
  0x64   :  { %1994 = vmatmul.mubr.bf16.gmra.mxu1 %v2555_v19  ;;  %1913 = vmatprep.mubr.bf16.mxu0 %v2570_v20  ;;  %v2544_v19 = vcombine.high %v30_v14, %v38_v15  ;;  %v45_v20 = vld [vmem:[%s4414_s0 + $0xa0] sm:$0xff] }
  0x65   :  { %2001 = vmatprep.mubr.bf16.mxu1 %v2572_v22  ;;  %3015 = vmatpush3.bf16.msra.mxu0 %v3366_v21  ;;  %v53_v21 = vld [vmem:[%s4414_s0 + $0xe0] sm:$0xff]  ;;  %v46_v22 = vld [vmem:[%s4414_s0 + $0xa8] sm:$0xff] }
  0x66   :  { %3073 = vmatpush3.bf16.msra.mxu1 %v3367_v23  ;;  %3016 = vmatprep.subr.bf16.mxu0 %v3368_v24  ;;  %v54_v23 = vld [vmem:[%s4414_s0 + $0xe8] sm:$0xff]  ;;  %v2541_v24 = vcombine.low %v29_v12, %v37_v13  ;;  %v2558_v26 = vcombine.high %v45_v20, %v53_v21 }
  0x67   :  { %3074 = vmatprep.subr.bf16.mxu1 %v3369_v27  ;;  %v3394_v27 = vld [vmem:[%s4415_s1 + $0x338] sm:$0xff]   ;;  %v2560_v28 = vcombine.high %v46_v22, %v54_v23  ;;  %v2559_v41 = vcombine.low %v46_v22, %v54_v23 }
  0x69   :  { %3017 = vmatpush3.bf16.msra.mxu0 %v3370_v30  ;;  %v3396_v30 = vld [vmem:[%s4415_s1 + $0x370] sm:$0xff]  }
  0x6a   :  { %3075 = vmatpush3.bf16.msra.mxu1 %v3371_v31  ;;  %3018 = vmatprep.subr.bf16.mxu0 %v3372_v32  ;;  %v61_v31 = vld [vmem:[%s4414_s0 + $0x120] sm:$0xff] }
  0x6b   :  { %1914 = vmatmul.mubr.bf16.gmra.mxu0 %v2569_v33  ;;  %3076 = vmatprep.subr.bf16.mxu1 %v3373_v34  ;;  %v69_v32 = vld [vmem:[%s4414_s0 + $0x160] sm:$0xff]  ;;  %v3397_v33 = vld [vmem:[%s4415_s1 + $0x3f0] sm:$0xff]   ;;  %v62_v34 = vld [vmem:[%s4414_s0 + $0x128] sm:$0xff] }
  0x6c   :  { %2002 = vmatmul.mubr.bf16.gmra.mxu1 %v2571_v35  ;;  %1921 = vmatprep.mubr.bf16.mxu0 %v2586_v36  ;;  %v70_v35 = vld [vmem:[%s4414_s0 + $0x168] sm:$0xff]  ;;  %v3398_v36 = vld [vmem:[%s4415_s1 + $0x330] sm:$0xff]   ;;  %v2574_v42 = vcombine.high %v61_v31, %v69_v32 }
  0x6d   :  { %2009 = vmatprep.mubr.bf16.mxu1 %v2588_v38  ;;  %3019 = vmatpush3.bf16.msra.mxu0 %v3374_v37  ;;  %v3399_v37 = vld [vmem:[%s4415_s1 + $0x3b0] sm:$0xff]   ;;  %v3400_v38 = vld [vmem:[%s4415_s1 + $0x368] sm:$0xff]   ;;  %v2575_v57 = vcombine.low %v62_v34, %v70_v35 }
  0x6e   :  { %3077 = vmatpush3.bf16.msra.mxu1 %v3375_v39  ;;  %3020 = vmatprep.subr.bf16.mxu0 %v3376_v40  ;;  %v2557_v39 = vcombine.low %v45_v20, %v53_v21  ;;  %v3401_v40 = vld [vmem:[%s4415_s1 + $0x3e8] sm:$0xff]  }
  0x6f   :  { %3078 = vmatprep.subr.bf16.mxu1 %v3377_v43  ;;  %v2576_v43 = vcombine.high %v62_v34, %v70_v35 }
  0x71   :  { %3021 = vmatpush3.bf16.msra.mxu0 %v3378_v46  ;;  %v3404_v46 = vld [vmem:[%s4415_s1 + $0x360] sm:$0xff]  }
  0x72   :  { %3079 = vmatpush3.bf16.msra.mxu1 %v3379_v47  ;;  %3022 = vmatprep.subr.bf16.mxu0 %v3384_v48  ;;  %v3405_v47 = vld [vmem:[%s4415_s1 + $0x3e0] sm:$0xff]  }
  0x73   :  { %1922 = vmatmul.mubr.bf16.gmra.mxu0 %v2585_v49  ;;  %3080 = vmatprep.subr.bf16.mxu1 %v3385_v50  ;;  %v77_v48 = vld [vmem:[%s4414_s0 + $0x1a0] sm:$0xff]  ;;  %v78_v50 = vld [vmem:[%s4414_s0 + $0x1a8] sm:$0xff] }
  0x74   :  { %2010 = vmatmul.mubr.bf16.gmra.mxu1 %v2587_v51  ;;  %1929 = vmatprep.mubr.bf16.mxu0 %v2602_v52  ;;  %v85_v49 = vld [vmem:[%s4414_s0 + $0x1e0] sm:$0xff]  ;;  %v86_v52 = vld [vmem:[%s4414_s0 + $0x1e8] sm:$0xff] }
  0x75   :  { %2017 = vmatprep.mubr.bf16.mxu1 %v2604_v53  ;;  %3023 = vmatpush3.bf16.msra.mxu0 %v3386_v54  ;;  %v3406_v51 = vld [vmem:[%s4415_s1 + $0x320] sm:$0xff]   ;;  %v3408_v54 = vld [vmem:[%s4415_s1 + $0x358] sm:$0xff]   ;;  %v2592_v59 = vcombine.high %v78_v50, %v86_v52 }
  0x76   :  { %3081 = vmatpush3.bf16.msra.mxu1 %v3387_v55  ;;  %3024 = vmatprep.subr.bf16.mxu0 %v3388_v56  ;;  %v3407_v53 = vld [vmem:[%s4415_s1 + $0x3a0] sm:$0xff]   ;;  %v2573_v55 = vcombine.low %v61_v31, %v69_v32  ;;  %v3409_v56 = vld [vmem:[%s4415_s1 + $0x3d8] sm:$0xff]  }
  0x77   :  { %3082 = vmatprep.subr.bf16.mxu1 %v3389_v58  ;;  %v2590_v58 = vcombine.high %v77_v48, %v85_v49 }
  0x79   :  { %3025 = vmatpush3.bf16.msra.mxu0 %v3390_v62 }
  0x7a   :  { %3083 = vmatpush3.bf16.msra.mxu1 %v3391_v63  ;;  %3126 = vmatprep.subr.bf16.mxu0 %v3392_v0 }
  0x7b   :  { %1930 = vmatmul.mubr.bf16.gmra.mxu0 %v2601_v1  ;;  %3184 = vmatprep.subr.bf16.mxu1 %v3393_v2 }
  0x7c   :  { %2018 = vmatmul.mubr.bf16.gmra.mxu1 %v2603_v3  ;;  %1937 = vmatprep.mubr.bf16.mxu0 %v2618_v4 }
  0x7d   :  { %2025 = vmatprep.mubr.bf16.mxu1 %v2620_v5 }
  0x83   :  { %1938 = vmatmul.mubr.bf16.gmra.mxu0 %v2617_v8 }
  0x84   :  { %2026 = vmatmul.mubr.bf16.gmra.mxu1 %v2619_v9  ;;  %1945 = vmatprep.mubr.bf16.mxu0 %v2634_v10 }
  0x85   :  { %2033 = vmatprep.mubr.bf16.mxu1 %v2636_v11 }
  0x8b   :  { %1946 = vmatmul.mubr.bf16.gmra.mxu0 %v2633_v16 }
  0x8c   :  { %2034 = vmatmul.mubr.bf16.gmra.mxu1 %v2635_v17  ;;  %2073 = vmatprep.mubr.bf16.mxu0 %v2542_v18 }
  0x8d   :  { %2161 = vmatprep.mubr.bf16.mxu1 %v2544_v19 }
  0x93   :  { %2074 = vmatmul.mubr.bf16.vlgmr.msra.gmra.mxu0 %v2541_v24 }
  0x94   :  { %2162 = vmatmul.mubr.bf16.vlgmr.msra.gmra.mxu1 %v2543_v25  ;;  %2081 = vmatprep.mubr.bf16.mxu0 %v2558_v26 }
  0x95   :  { %2169 = vmatprep.mubr.bf16.mxu1 %v2560_v28  ;;  %3127 = vmatpush3.bf16.msra.mxu0 %v3394_v27 }
  0x96   :  { %3185 = vmatpush3.bf16.msra.mxu1 %v3395_v29  ;;  %3128 = vmatprep.subr.bf16.mxu0 %v3396_v30 }
  0x97   :  { %3186 = vmatprep.subr.bf16.mxu1 %v3397_v33 }
  0x99   :  { %3129 = vmatpush3.bf16.msra.mxu0 %v3398_v36 }
  0x9a   :  { %3187 = vmatpush3.bf16.msra.mxu1 %v3399_v37  ;;  %3130 = vmatprep.subr.bf16.mxu0 %v3400_v38 }
  0x9b   :  { %2082 = vmatmul.mubr.bf16.gmra.mxu0 %v2557_v39  ;;  %3188 = vmatprep.subr.bf16.mxu1 %v3401_v40 }
  0x9c   :  { %2170 = vmatmul.mubr.bf16.gmra.mxu1 %v2559_v41  ;;  %2089 = vmatprep.mubr.bf16.mxu0 %v2574_v42 }
  0x9d   :  { %2177 = vmatprep.mubr.bf16.mxu1 %v2576_v43  ;;  %3131 = vmatpush3.bf16.msra.mxu0 %v3402_v44 }
  0x9e   :  { %3189 = vmatpush3.bf16.msra.mxu1 %v3403_v45  ;;  %3132 = vmatprep.subr.bf16.mxu0 %v3404_v46 }
  0x9f   :  { %3190 = vmatprep.subr.bf16.mxu1 %v3405_v47 }
  0xa1   :  { %3133 = vmatpush3.bf16.msra.mxu0 %v3406_v51 }
  0xa2   :  { %11 = vsyncpa [#allocation3], 0  ;;  %3191 = vmatpush3.bf16.msra.mxu1 %v3407_v53  ;;  %3134 = vmatprep.subr.bf16.mxu0 %v3408_v54  ;;  %v3411_v61 = vld [vmem:[%s4415_s1 + $0x398] sm:$0xff]   ;;  %v3412_v62 = vld [vmem:[%s4415_s1 + $0x350] sm:$0xff]   ;;  %v2589_v7 = vcombine.low %v77_v48, %v85_v49  ;;  %v2591_v9 = vcombine.low %v78_v50, %v86_v52  ;;  %vm3457_vm0 = vmmov 0   ;;  %vm2405_vm1 = vcmask 1041408  }
  0xa3   :  { %2090 = vmatmul.mubr.bf16.gmra.mxu0 %v2573_v55  ;;  %3192 = vmatprep.subr.bf16.mxu1 %v3409_v56  ;;  %v3413_v63 = vld [vmem:[%s4415_s1 + $0x3d0] sm:$0xff]   ;;  %v93_v0 = vld [vmem:[%s4414_s0 + $0x220] sm:$0xff]  ;;  %v94_v2 = vld [vmem:[%s4414_s0 + $0x228] sm:$0xff]  ;;  %vm2401_vm2 = vcmask 801792   ;;  %vm2479_vm3 = vcmask 254976   ;;  %s3458_s7 = smov [#allocation2]  }
  0xa4   :  { %2178 = vmatmul.mubr.bf16.gmra.mxu1 %v2575_v57  ;;  %2097 = vmatprep.mubr.bf16.mxu0 %v2590_v58  ;;  %v101_v1 = vld [vmem:[%s4414_s0 + $0x260] sm:$0xff]  ;;  %v3414_v3 = vld [vmem:[%s4415_s1 + $0x310] sm:$0xff]   ;;  %v102_v4 = vld [vmem:[%s4414_s0 + $0x268] sm:$0xff]  ;;  %s2525_s8 = sshll.u32 %s3458_s7, 4  ;;  %s2526_s8 = int_to_ptr.vmem [resolvable:$true] %s2525_s8 }
  0xa5   :  { %2185 = vmatprep.mubr.bf16.mxu1 %v2592_v59  ;;  %3135 = vmatpush3.bf16.msra.mxu0 %v3410_v60  ;;  %v3415_v5 = vld [vmem:[%s4415_s1 + $0x390] sm:$0xff]   ;;  %v3420_v6 = vld [vmem:[%s4415_s1 + $0x348] sm:$0xff]   ;;  %v2606_v10 = vcombine.high %v93_v0, %v101_v1  ;;  %v2608_v11 = vcombine.high %v94_v2, %v102_v4  ;;  %v3424_v14 = vld [vmem:[%s4415_s1 + $0x340] sm:$0xff]   ;;  %v2605_v22 = vcombine.low %v93_v0, %v101_v1  ;;  %s3434_s9 = scalar_lea.vmem %s2526_s8, 32  ;;  %p3439_p1 = scmp.lt.s32.totalorder %s2526_s8, %s2526_s8 }
  0xa6   :  { %3193 = vmatpush3.bf16.msra.mxu1 %v3411_v61  ;;  %3136 = vmatprep.subr.bf16.mxu0 %v3412_v62  ;;  %v3421_v8 = vld [vmem:[%s4415_s1 + $0x3c8] sm:$0xff]   ;;  %v3425_v15 = vld [vmem:[%s4415_s1 + $0x3c0] sm:$0xff]   ;;  %v2607_v23 = vcombine.low %v94_v2, %v102_v4  ;;  %v31_v32 = vld [vmem:[%s4414_s0 + $0x30] sm:$0xff]  ;;  %p3435_p0 = scmp.ne.s32.totalorder %s2526_s8, %s3434_s9  ;;  %p3440_p2 = scmp.lt.s32.totalorder %s3434_s9, %s3434_s9 }
  0xa7   :  { %3194 = vmatprep.subr.bf16.mxu1 %v3413_v63  ;;  %v3422_v12 = vld [vmem:[%s4415_s1 + $0x308] sm:$0xff]   ;;  %v109_v16 = vld [vmem:[%s4414_s0 + $0x2a0] sm:$0xff]  ;;  %v39_v33 = vld [vmem:[%s4414_s0 + $0x70] sm:$0xff] }
  0xa8   :  { %v3423_v13 = vld [vmem:[%s4415_s1 + $0x388] sm:$0xff]   ;;  %v117_v17 = vld [vmem:[%s4414_s0 + $0x2e0] sm:$0xff]  ;;  %v32_v34 = vld [vmem:[%s4414_s0 + $0x38] sm:$0xff]  ;;  %v2546_v38 = vcombine.high %v31_v32, %v39_v33  ;;  %v2545_v44 = vcombine.low %v31_v32, %v39_v33  ;;  %p3441_p3 = por %p3440_p2, %p3439_p1 }
  0xa9   :  { %3137 = vmatpush3.bf16.msra.mxu0 %v3414_v3  ;;  %v3426_v18 = vld [vmem:[%s4415_s1 + $0x300] sm:$0xff]   ;;  %v110_v19 = vld [vmem:[%s4414_s0 + $0x2a8] sm:$0xff]  ;;  %v2622_v24 = vcombine.high %v109_v16, %v117_v17  ;;  %v2621_v28 = vcombine.low %v109_v16, %v117_v17  ;;  %v40_v35 = vld [vmem:[%s4414_s0 + $0x78] sm:$0xff] }
  0xaa   :  { %3195 = vmatpush3.bf16.msra.mxu1 %v3415_v5  ;;  %3138 = vmatprep.subr.bf16.mxu0 %v3420_v6  ;;  %v118_v20 = vld [vmem:[%s4414_s0 + $0x2e8] sm:$0xff]  ;;  %v3427_v21 = vld [vmem:[%s4415_s1 + $0x380] sm:$0xff]   ;;  %v2548_v39 = vcombine.high %v32_v34, %v40_v35  ;;  %v47_v40 = vld [vmem:[%s4414_s0 + $0xb0] sm:$0xff]  ;;  %v2547_v45 = vcombine.low %v32_v34, %v40_v35  ;;  %p3442_p4 = pnand %p3441_p3, %p3435_p0 }
  0xab   :  { %2098 = vmatmul.mubr.bf16.gmra.mxu0 %v2589_v7  ;;  %3196 = vmatprep.subr.bf16.mxu1 %v3421_v8  ;;  %v2624_v25 = vcombine.high %v110_v19, %v118_v20  ;;  %v125_v26 = vld [vmem:[%s4414_s0 + $0x320] sm:$0x11]  ;;  %v126_v27 = vld [vmem:[%s4414_s0 + $0x328] sm:$0x11]  ;;  %v2623_v29 = vcombine.low %v110_v19, %v118_v20  ;;  %v55_v41 = vld [vmem:[%s4414_s0 + $0xf0] sm:$0xff] }
  0xac   :  { %2186 = vmatmul.mubr.bf16.gmra.mxu1 %v2591_v9  ;;  %2105 = vmatprep.mubr.bf16.mxu0 %v2606_v10  ;;  %v2638_v30 = vcombine.high %v125_v26, %v125_v26  ;;  %v2640_v31 = vcombine.high %v126_v27, %v126_v27  ;;  %v2637_v36 = vcombine.low %v125_v26, %v125_v26  ;;  %v48_v42 = vld [vmem:[%s4414_s0 + $0xb8] sm:$0xff]  ;;  %v63_v48 = vld [vmem:[%s4414_s0 + $0x130] sm:$0xff] }
  0xad   :  { %2193 = vmatprep.mubr.bf16.mxu1 %v2608_v11  ;;  %3139 = vmatpush3.bf16.msra.mxu0 %v3422_v12  ;;  %v2639_v37 = vcombine.low %v126_v27, %v126_v27  ;;  %v56_v43 = vld [vmem:[%s4414_s0 + $0xf8] sm:$0xff]  ;;  %v2562_v46 = vcombine.high %v47_v40, %v55_v41  ;;  %v71_v49 = vld [vmem:[%s4414_s0 + $0x170] sm:$0xff]  ;;  %v2561_v52 = vcombine.low %v47_v40, %v55_v41 }
  0xae   :  { %3197 = vmatpush3.bf16.msra.mxu1 %v3423_v13  ;;  %3140 = vmatprep.subr.bf16.mxu0 %v3424_v14  ;;  %v2564_v47 = vcombine.high %v48_v42, %v56_v43  ;;  %v64_v50 = vld [vmem:[%s4414_s0 + $0x138] sm:$0xff]  ;;  %v2563_v53 = vcombine.low %v48_v42, %v56_v43  ;;  %v2578_v54 = vcombine.high %v63_v48, %v71_v49  ;;  %v79_v56 = vld [vmem:[%s4414_s0 + $0x1b0] sm:$0xff] }
  0xaf   :  { %3198 = vmatprep.subr.bf16.mxu1 %v3425_v15  ;;  %v72_v51 = vld [vmem:[%s4414_s0 + $0x178] sm:$0xff]  ;;  %v87_v57 = vld [vmem:[%s4414_s0 + $0x1f0] sm:$0xff]  ;;  %v2577_v60 = vcombine.low %v63_v48, %v71_v49 }
  0xb0   :  { %v2580_v55 = vcombine.high %v64_v50, %v72_v51  ;;  %v80_v58 = vld [vmem:[%s4414_s0 + $0x1b8] sm:$0xff]  ;;  %v2579_v61 = vcombine.low %v64_v50, %v72_v51  ;;  %v2594_v62 = vcombine.high %v79_v56, %v87_v57  ;;  %v95_v0 = vld [vmem:[%s4414_s0 + $0x230] sm:$0xff]  ;;  %v2593_v4 = vcombine.low %v79_v56, %v87_v57 }
  0xb1   :  { %3141 = vmatpush3.bf16.msra.mxu0 %v3426_v18  ;;  %v88_v59 = vld [vmem:[%s4414_s0 + $0x1f8] sm:$0xff]  ;;  %v103_v1 = vld [vmem:[%s4414_s0 + $0x270] sm:$0xff] }
  0xb2   :  { %3199 = vmatpush3.bf16.msra.mxu1 %v3427_v21  ;;  %v2596_v63 = vcombine.high %v80_v58, %v88_v59  ;;  %v96_v2 = vld [vmem:[%s4414_s0 + $0x238] sm:$0xff]  ;;  %v2595_v5 = vcombine.low %v80_v58, %v88_v59  ;;  %v2610_v6 = vcombine.high %v95_v0, %v103_v1  ;;  %v111_v11 = vld [vmem:[%s4414_s0 + $0x2b0] sm:$0xff]  ;;  %v2609_v19 = vcombine.low %v95_v0, %v103_v1 }
  0xb3   :  { %2106 = vmatmul.mubr.bf16.gmra.mxu0 %v2605_v22  ;;  %v104_v3 = vld [vmem:[%s4414_s0 + $0x278] sm:$0xff]  ;;  %v119_v12 = vld [vmem:[%s4414_s0 + $0x2f0] sm:$0xff] }
  0xb4   :  { %2194 = vmatmul.mubr.bf16.gmra.mxu1 %v2607_v23  ;;  %2113 = vmatprep.mubr.bf16.mxu0 %v2622_v24  ;;  %v2612_v7 = vcombine.high %v96_v2, %v104_v3  ;;  %v112_v15 = vld [vmem:[%s4414_s0 + $0x2b8] sm:$0xff]  ;;  %v2611_v21 = vcombine.low %v96_v2, %v104_v3  ;;  %v2626_v22 = vcombine.high %v111_v11, %v119_v12  ;;  %v127_v33 = vld [vmem:[%s4414_s0 + $0x330] sm:$0x11] }
  0xb5   :  { %2201 = vmatprep.mubr.bf16.mxu1 %v2624_v25  ;;  %v120_v16 = vld [vmem:[%s4414_s0 + $0x2f8] sm:$0xff]  ;;  %v2642_v42 = vcombine.high %v127_v33, %v127_v33  ;;  %v2641_v57 = vcombine.low %v127_v33, %v127_v33 }
  0xb6   :  { %v2628_v25 = vcombine.high %v112_v15, %v120_v16  ;;  %v2627_v41 = vcombine.low %v112_v15, %v120_v16 }
  0xbb   :  { %2114 = vmatmul.mubr.bf16.gmra.mxu0 %v2621_v28 }
  0xbc   :  { %2202 = vmatmul.mubr.bf16.gmra.mxu1 %v2623_v29  ;;  %2121 = vmatprep.mubr.bf16.mxu0 %v2638_v30 }
  0xbd   :  { %2209 = vmatprep.mubr.bf16.mxu1 %v2640_v31 }
  0xc3   :  { %2122 = vmatmul.mubr.bf16.gmra.mxu0 %v2637_v36  ;;  %v128_v36 = vld [vmem:[%s4414_s0 + $0x338] sm:$0x11] }
  0xc4   :  { %2210 = vmatmul.mubr.bf16.gmra.mxu1 %v2639_v37  ;;  %2249 = vmatprep.mubr.bf16.mxu0 %v2546_v38  ;;  %v2643_v59 = vcombine.low %v128_v36, %v128_v36 }
  0xc5   :  { %2337 = vmatprep.mubr.bf16.mxu1 %v2548_v39  ;;  %v2625_v39 = vcombine.low %v111_v11, %v119_v12 }
  0xcb   :  { %2250 = vmatmul.mubr.bf16.vlgmr.msra.gmra.mxu0 %v2545_v44 }
  0xcc   :  { %2338 = vmatmul.mubr.bf16.vlgmr.msra.gmra.mxu1 %v2547_v45  ;;  %2257 = vmatprep.mubr.bf16.mxu0 %v2562_v46  ;;  %v2644_v45 = vcombine.high %v128_v36, %v128_v36 }
  0xcd   :  { %2345 = vmatprep.mubr.bf16.mxu1 %v2564_v47 }
  0xd3   :  { %2258 = vmatmul.mubr.bf16.gmra.mxu0 %v2561_v52 }
  0xd4   :  { %2346 = vmatmul.mubr.bf16.gmra.mxu1 %v2563_v53  ;;  %2265 = vmatprep.mubr.bf16.mxu0 %v2578_v54 }
  0xd5   :  { %2353 = vmatprep.mubr.bf16.mxu1 %v2580_v55 }
  0xdb   :  { %2266 = vmatmul.mubr.bf16.gmra.mxu0 %v2577_v60 }
  0xdc   :  { %2354 = vmatmul.mubr.bf16.gmra.mxu1 %v2579_v61  ;;  %2273 = vmatprep.mubr.bf16.mxu0 %v2594_v62 }
  0xdd   :  { %2361 = vmatprep.mubr.bf16.mxu1 %v2596_v63 }
  0xe3   :  { %v2794_v8 = vpop.f32.mrf.mxu0  ;;  %2274 = vmatmul.mubr.bf16.gmra.mxu0 %v2593_v4 }
  0xe4   :  { %v2852_v9 = vpop.f32.mrf.mxu1  ;;  %2362 = vmatmul.mubr.bf16.gmra.mxu1 %v2595_v5  ;;  %2281 = vmatprep.mubr.bf16.mxu0 %v2610_v6 }
  0xe5   :  { %v2795_v10 = vpop.f32.mrf.mxu0  ;;  %2369 = vmatprep.mubr.bf16.mxu1 %v2612_v7 }
  0xe6   :  { %v2796_v13 = vadd.f32 %v2795_v10, %v2794_v8  ;;  %v2853_v14 = vpop.f32.mrf.mxu1 }
  0xe7   :  { %v2854_v17 = vadd.f32 %v2853_v14, %v2852_v9  ;;  %v2797_v18 = vpop.f32.mrf.mxu0 }
  0xe8   :  { %v2855_v20 = vpop.f32.mrf.mxu1 }
  0xe9   :  { %v4184_v23 = vadd.f32 %v2854_v17, %v2796_v13  ;;  %v2798_v24 = vpop.f32.mrf.mxu0 }
  0xea   :  { %v2799_v26 = vadd.f32 %v2798_v24, %v2797_v18  ;;  %v2856_v27 = vpop.f32.mrf.mxu1 }
  0xeb   :  { %v2857_v28 = vadd.f32 %v2856_v27, %v2855_v20  ;;  %v2800_v29 = vpop.f32.mrf.mxu0  ;;  %2282 = vmatmul.mubr.bf16.gmra.mxu0 %v2609_v19 }
  0xec   :  { %v2858_v30 = vpop.f32.mrf.mxu1  ;;  %2370 = vmatmul.mubr.bf16.gmra.mxu1 %v2611_v21  ;;  %2289 = vmatprep.mubr.bf16.mxu0 %v2626_v22 }
  0xed   :  { %v4186_v31 = vadd.f32 %v2857_v28, %v2799_v26  ;;  %v2801_v32 = vpop.f32.mrf.mxu0  ;;  %2377 = vmatprep.mubr.bf16.mxu1 %v2628_v25 }
  0xee   :  { %v2802_v34 = vadd.f32 %v2801_v32, %v2800_v29  ;;  %v2859_v35 = vpop.f32.mrf.mxu1 }
  0xef   :  { %v2860_v37 = vadd.f32 %v2859_v35, %v2858_v30  ;;  %v2803_v38 = vpop.f32.mrf.mxu0 }
  0xf0   :  { %v2861_v40 = vpop.f32.mrf.mxu1 }
  0xf1   :  { %v4194_v43 = vadd.f32 %v2860_v37, %v2802_v34  ;;  %v2804_v44 = vpop.f32.mrf.mxu0 }
  0xf2   :  { %v2805_v46 = vadd.f32 %v2804_v44, %v2803_v38  ;;  %v2862_v47 = vpop.f32.mrf.mxu1 }
  0xf3   :  { %v2863_v48 = vadd.f32 %v2862_v47, %v2861_v40  ;;  %v2806_v49 = vpop.f32.mrf.mxu0  ;;  %2290 = vmatmul.mubr.bf16.gmra.mxu0 %v2625_v39 }
  0xf4   :  { %v2864_v50 = vpop.f32.mrf.mxu1  ;;  %2378 = vmatmul.mubr.bf16.gmra.mxu1 %v2627_v41  ;;  %2297 = vmatprep.mubr.bf16.mxu0 %v2642_v42 }
  0xf5   :  { %v4196_v51 = vadd.f32 %v2863_v48, %v2805_v46  ;;  %v2807_v52 = vpop.f32.mrf.mxu0  ;;  %2385 = vmatprep.mubr.bf16.mxu1 %v2644_v45 }
  0xf6   :  { %v2808_v53 = vadd.f32 %v2807_v52, %v2806_v49  ;;  %v2865_v54 = vpop.f32.mrf.mxu1 }
  0xf7   :  { %v2866_v55 = vadd.f32 %v2865_v54, %v2864_v50  ;;  %v2809_v56 = vpop.f32.mrf.mxu0 }
  0xf8   :  { %v2867_v58 = vpop.f32.mrf.mxu1 }
  0xf9   :  { %v4198_v60 = vadd.f32 %v2866_v55, %v2808_v53  ;;  %v2810_v61 = vpop.f32.mrf.mxu0 }
  0xfa   :  { %v2811_v62 = vadd.f32 %v2810_v61, %v2809_v56  ;;  %v2868_v63 = vpop.f32.mrf.mxu1 }
  0xfb   :  { %v2869_v0 = vadd.f32 %v2868_v63, %v2867_v58  ;;  %v2812_v1 = vpop.f32.mrf.mxu0  ;;  %2298 = vmatmul.mubr.bf16.gmra.mxu0 %v2641_v57 }
  0xfc   :  { %v2870_v2 = vpop.f32.mrf.mxu1  ;;  %2386 = vmatmul.mubr.bf16.gmra.mxu1 %v2643_v59 }
  0xfd   :  { %v4200_v3 = vadd.f32 %v2869_v0, %v2811_v62  ;;  %v2813_v4 = vpop.f32.mrf.mxu0 }
  0xfe   :  { %v2814_v5 = vadd.f32 %v2813_v4, %v2812_v1  ;;  %v2871_v6 = vpop.f32.mrf.mxu1 }
  0xff   :  { %v2872_v7 = vadd.f32 %v2871_v6, %v2870_v2  ;;  %v2815_v8 = vpop.f32.mrf.mxu0 }
 0x100   :  { %v2873_v9 = vpop.f32.mrf.mxu1 }
 0x101   :  { %v4202_v10 = vadd.f32 %v2872_v7, %v2814_v5  ;;  %v2816_v11 = vpop.f32.mrf.mxu0 }
 0x102   :  { %v2817_v12 = vadd.f32 %v2816_v11, %v2815_v8  ;;  %v2874_v13 = vpop.f32.mrf.mxu1 }
 0x103   :  { %v2875_v14 = vadd.f32 %v2874_v13, %v2873_v9  ;;  %v2818_v15 = vpop.f32.mrf.mxu0 }
 0x104   :  { %v2876_v16 = vpop.f32.mrf.mxu1 }
 0x105   :  { %v4204_v17 = vadd.f32 %v2875_v14, %v2817_v12  ;;  %v2819_v18 = vpop.f32.mrf.mxu0 }
 0x106   :  { %v2820_v19 = vadd.f32 %v2819_v18, %v2818_v15  ;;  %v2877_v20 = vpop.f32.mrf.mxu1 }
 0x107   :  { %v2878_v21 = vadd.f32 %v2877_v20, %v2876_v16  ;;  %v2821_v22 = vpop.f32.mrf.mxu0 }
 0x108   :  { %v2879_v24 = vpop.f32.mrf.mxu1 }
 0x109   :  { %v4206_v25 = vadd.f32 %v2878_v21, %v2820_v19  ;;  %v2822_v26 = vpop.f32.mrf.mxu0 }
 0x10a   :  { %v2823_v27 = vadd.f32 %v2822_v26, %v2821_v22  ;;  %v2880_v28 = vpop.f32.mrf.mxu1 }
 0x10b   :  { %v2881_v29 = vadd.f32 %v2880_v28, %v2879_v24  ;;  %v2824_v30 = vpop.f32.mrf.mxu0 }
 0x10c   :  { %v2882_v32 = vpop.f32.mrf.mxu1 }
 0x10d   :  { %v4208_v33 = vadd.f32 %v2881_v29, %v2823_v27  ;;  %v2825_v34 = vpop.f32.mrf.mxu0 }
 0x10e   :  { %v2826_v35 = vadd.f32 %v2825_v34, %v2824_v30  ;;  %v2883_v36 = vpop.f32.mrf.mxu1 }
 0x10f   :  { %v2884_v37 = vadd.f32 %v2883_v36, %v2882_v32  ;;  %v2827_v38 = vpop.f32.mrf.mxu0 }
 0x110   :  { %v2885_v39 = vpop.f32.mrf.mxu1 }
 0x111   :  { %v4210_v40 = vadd.f32 %v2884_v37, %v2826_v35  ;;  %v2828_v41 = vpop.f32.mrf.mxu0 }
 0x112   :  { %v2829_v42 = vadd.f32 %v2828_v41, %v2827_v38  ;;  %v2886_v44 = vpop.f32.mrf.mxu1 }
 0x113   :  { %v2887_v45 = vadd.f32 %v2886_v44, %v2885_v39  ;;  %v2830_v46 = vpop.f32.mrf.mxu0 }
 0x114   :  { %v2888_v47 = vpop.f32.mrf.mxu1 }
 0x115   :  { %v4212_v48 = vadd.f32 %v2887_v45, %v2829_v42  ;;  %v2831_v49 = vpop.f32.mrf.mxu0 }
 0x116   :  { %v2832_v50 = vadd.f32 %v2831_v49, %v2830_v46  ;;  %v2889_v52 = vpop.f32.mrf.mxu1 }
 0x117   :  { %v2890_v53 = vadd.f32 %v2889_v52, %v2888_v47  ;;  %v2833_v54 = vpop.f32.mrf.mxu0 }
 0x118   :  { %v2891_v55 = vpop.f32.mrf.mxu1 }
 0x119   :  { %v4214_v56 = vadd.f32 %v2890_v53, %v2832_v50  ;;  %v2834_v57 = vpop.f32.mrf.mxu0 }
 0x11a   :  { %v2892_v58 = vpop.f32.mrf.mxu1 }
 0x11b   :  { %v2910_v59 = vpop.f32.mrf.mxu0 }
 0x11c   :  { %v2968_v61 = vpop.f32.mrf.mxu1 }
 0x11d   :  { %v2911_v62 = vpop.f32.mrf.mxu0 }
 0x11e   :  { %v2912_v63 = vadd.f32 %v2911_v62, %v2910_v59  ;;  %v2969_v0 = vpop.f32.mrf.mxu1 }
 0x11f   :  { %v2970_v1 = vadd.f32 %v2969_v0, %v2968_v61  ;;  %v2913_v2 = vpop.f32.mrf.mxu0 }
 0x120   :  { %v1900_v4 = vadd.f32 %v2912_v63, %v4184_v23  ;;  %v2971_v5 = vpop.f32.mrf.mxu1 }
 0x121   :  { %v2914_v6 = vpop.f32.mrf.mxu0 }
 0x122   :  { %v4217_v7 = vadd.f32 %v2970_v1, %v1900_v4  ;;  %v2915_v8 = vadd.f32 %v2914_v6, %v2913_v2  ;;  %v2972_v9 = vpop.f32.mrf.mxu1 }
 0x123   :  { %v2973_v11 = vadd.f32 %v2972_v9, %v2971_v5  ;;  %v2916_v12 = vpop.f32.mrf.mxu0 }
 0x124   :  { %v1903_v13 = vadd.f32 %v2915_v8, %v4186_v31  ;;  %v2974_v14 = vpop.f32.mrf.mxu1 }
 0x125   :  { %v2917_v15 = vpop.f32.mrf.mxu0 }
 0x126   :  { %v4220_v16 = vadd.f32 %v2973_v11, %v1903_v13  ;;  %v2918_v18 = vadd.f32 %v2917_v15, %v2916_v12  ;;  %v2975_v19 = vpop.f32.mrf.mxu1 }
 0x127   :  { %v2976_v20 = vadd.f32 %v2975_v19, %v2974_v14  ;;  %v2919_v21 = vpop.f32.mrf.mxu0 }
 0x128   :  { %v1908_v23 = vadd.f32 %v2918_v18, %v4194_v43  ;;  %v2977_v22 = vpop.f32.mrf.mxu1 }
 0x129   :  { %v2920_v24 = vpop.f32.mrf.mxu0 }
 0x12a   :  { %v4223_v26 = vadd.f32 %v2976_v20, %v1908_v23  ;;  %v2921_v27 = vadd.f32 %v2920_v24, %v2919_v21  ;;  %v2978_v28 = vpop.f32.mrf.mxu1  ;;  %v4421_v23 = vmov 0.0  }
 0x12b   :  { %v2979_v29 = vadd.f32 %v2978_v28, %v2977_v22  ;;  %v2922_v30 = vpop.f32.mrf.mxu0  ;;  %3256 = vmatprep.subr.mxu0 %v4421_v23  ;;  %3282 = vmatprep.mubr.msk.f32.mxu0 %vm3457_vm0, %v4421_v23 }
 0x12c   :  { %v1911_v31 = vadd.f32 %v2921_v27, %v4196_v51  ;;  %v2980_v32 = vpop.f32.mrf.mxu1 }
 0x12d   :  { %v2923_v34 = vpop.f32.mrf.mxu0 }
 0x12e   :  { %v4226_v35 = vadd.f32 %v2979_v29, %v1911_v31  ;;  %v2924_v36 = vadd.f32 %v2923_v34, %v2922_v30  ;;  %v2981_v37 = vpop.f32.mrf.mxu1 }
 0x12f   :  { %v2982_v38 = vadd.f32 %v2981_v37, %v2980_v32  ;;  %v2925_v39 = vpop.f32.mrf.mxu0 }
 0x130   :  { %v1916_v43 = vadd.f32 %v2924_v36, %v4198_v60  ;;  %v2983_v41 = vpop.f32.mrf.mxu1 }
 0x131   :  { %v2926_v42 = vpop.f32.mrf.mxu0 }
 0x132   :  { %v4229_v44 = vadd.f32 %v2982_v38, %v1916_v43  ;;  %v2927_v45 = vadd.f32 %v2926_v42, %v2925_v39  ;;  %v2984_v46 = vpop.f32.mrf.mxu1 }
 0x133   :  { %v2985_v47 = vadd.f32 %v2984_v46, %v2983_v41  ;;  %v2928_v49 = vpop.f32.mrf.mxu0 }
 0x134   :  { %v1919_v51 = vadd.f32 %v2927_v45, %v4200_v3  ;;  %v2986_v50 = vpop.f32.mrf.mxu1 }
 0x135   :  { %v2929_v52 = vpop.f32.mrf.mxu0 }
 0x136   :  { %v4232_v53 = vadd.f32 %v2985_v47, %v1919_v51  ;;  %v2930_v54 = vadd.f32 %v2929_v52, %v2928_v49  ;;  %v2987_v55 = vpop.f32.mrf.mxu1 }
 0x137   :  { %v2988_v57 = vadd.f32 %v2987_v55, %v2986_v50  ;;  %v2931_v58 = vpop.f32.mrf.mxu0 }
 0x138   :  { %v1924_v60 = vadd.f32 %v2930_v54, %v4202_v10  ;;  %v2989_v59 = vpop.f32.mrf.mxu1 }
 0x139   :  { %v2932_v61 = vpop.f32.mrf.mxu0 }
 0x13a   :  { %v4235_v62 = vadd.f32 %v2988_v57, %v1924_v60  ;;  %v2933_v63 = vadd.f32 %v2932_v61, %v2931_v58  ;;  %v2990_v0 = vpop.f32.mrf.mxu1 }
 0x13b   :  { %v2991_v1 = vadd.f32 %v2990_v0, %v2989_v59  ;;  %v2934_v2 = vpop.f32.mrf.mxu0 }
 0x13c   :  { %v1927_v3 = vadd.f32 %v2933_v63, %v4204_v17  ;;  %v2992_v4 = vpop.f32.mrf.mxu1 }
 0x13d   :  { %v2935_v5 = vpop.f32.mrf.mxu0 }
 0x13e   :  { %v4238_v6 = vadd.f32 %v2991_v1, %v1927_v3  ;;  %v2936_v8 = vadd.f32 %v2935_v5, %v2934_v2  ;;  %v2993_v9 = vpop.f32.mrf.mxu1 }
 0x13f   :  { %v2994_v11 = vadd.f32 %v2993_v9, %v2992_v4  ;;  %v2937_v12 = vpop.f32.mrf.mxu0 }
 0x140   :  { %v1932_v10 = vadd.f32 %v2936_v8, %v4206_v25  ;;  %v2995_v13 = vpop.f32.mrf.mxu1 }
 0x141   :  { %v2938_v14 = vpop.f32.mrf.mxu0 }
 0x142   :  { %v4241_v15 = vadd.f32 %v2994_v11, %v1932_v10  ;;  %v2939_v18 = vadd.f32 %v2938_v14, %v2937_v12  ;;  %v2996_v19 = vpop.f32.mrf.mxu1 }
 0x143   :  { %v2997_v20 = vadd.f32 %v2996_v19, %v2995_v13  ;;  %v2940_v21 = vpop.f32.mrf.mxu0 }
 0x144   :  { %v1935_v17 = vadd.f32 %v2939_v18, %v4208_v33  ;;  %v2998_v22 = vpop.f32.mrf.mxu1 }
 0x145   :  { %v2941_v24 = vpop.f32.mrf.mxu0 }
 0x146   :  { %v4245_v27 = vadd.f32 %v2997_v20, %v1935_v17  ;;  %v2942_v28 = vadd.f32 %v2941_v24, %v2940_v21  ;;  %v2999_v29 = vpop.f32.mrf.mxu1 }
 0x147   :  { %v3000_v25 = vadd.f32 %v2999_v29, %v2998_v22  ;;  %v2943_v30 = vpop.f32.mrf.mxu0 }
 0x148   :  { %v1940_v31 = vadd.f32 %v2942_v28, %v4210_v40  ;;  %v3001_v32 = vpop.f32.mrf.mxu1 }
 0x149   :  { %v2944_v34 = vpop.f32.mrf.mxu0 }
 0x14a   :  { %v4248_v36 = vadd.f32 %v3000_v25, %v1940_v31  ;;  %v2945_v37 = vadd.f32 %v2944_v34, %v2943_v30  ;;  %v3002_v38 = vpop.f32.mrf.mxu1 }
 0x14b   :  { %v3003_v39 = vadd.f32 %v3002_v38, %v3001_v32  ;;  %v2946_v43 = vpop.f32.mrf.mxu0 }
 0x14c   :  { %v1943_v33 = vadd.f32 %v2945_v37, %v4212_v48  ;;  %v3004_v41 = vpop.f32.mrf.mxu1 }
 0x14d   :  { %v2947_v42 = vpop.f32.mrf.mxu0 }
 0x14e   :  { %v4251_v45 = vadd.f32 %v3003_v39, %v1943_v33  ;;  %v2948_v46 = vadd.f32 %v2947_v42, %v2946_v43  ;;  %v3005_v47 = vpop.f32.mrf.mxu1 }
 0x14f   :  { %v3006_v49 = vadd.f32 %v3005_v47, %v3004_v41  ;;  %v2949_v51 = vpop.f32.mrf.mxu0 }
 0x150   :  { %v1948_v40 = vadd.f32 %v2948_v46, %v4214_v56  ;;  %v3007_v50 = vpop.f32.mrf.mxu1 }
 0x151   :  { %v2950_v52 = vpop.f32.mrf.mxu0 }
 0x152   :  { %v4254_v54 = vadd.f32 %v3006_v49, %v1948_v40  ;;  %v3008_v55 = vpop.f32.mrf.mxu1 }
 0x153   :  { %v3026_v57 = vpop.f32.mrf.mxu0 }
 0x154   :  { %v3084_v58 = vpop.f32.mrf.mxu1 }
 0x155   :  { %v3027_v60 = vpop.f32.mrf.mxu0 }
 0x156   :  { %v3028_v59 = vadd.f32 %v3027_v60, %v3026_v57  ;;  %v3085_v48 = vpop.f32.mrf.mxu1 }
 0x157   :  { %v3086_v61 = vadd.f32 %v3085_v48, %v3084_v58  ;;  %v3029_v63 = vpop.f32.mrf.mxu0 }
 0x158   :  { %v2076_v0 = vadd.f32 %v3028_v59, %v4217_v7  ;;  %v3087_v1 = vpop.f32.mrf.mxu1 }
 0x159   :  { %v3030_v2 = vpop.f32.mrf.mxu0 }
 0x15a   :  { %v4257_v3 = vadd.f32 %v3086_v61, %v2076_v0  ;;  %v3031_v4 = vadd.f32 %v3030_v2, %v3029_v63  ;;  %v3088_v56 = vpop.f32.mrf.mxu1 }
 0x15b   :  { %v3089_v5 = vadd.f32 %v3088_v56, %v3087_v1  ;;  %v3032_v8 = vpop.f32.mrf.mxu0 }
 0x15c   :  { %v2079_v9 = vadd.f32 %v3031_v4, %v4220_v16  ;;  %v3090_v11 = vpop.f32.mrf.mxu1 }
 0x15d   :  { %v3033_v12 = vpop.f32.mrf.mxu0 }
 0x15e   :  { %v4261_v10 = vadd.f32 %v3089_v5, %v2079_v9  ;;  %v3034_v13 = vadd.f32 %v3033_v12, %v3032_v8  ;;  %v3091_v14 = vpop.f32.mrf.mxu1 }
 0x15f   :  { %v3092_v7 = vadd.f32 %v3091_v14, %v3090_v11  ;;  %v3035_v18 = vpop.f32.mrf.mxu0 }
 0x160   :  { %v2084_v19 = vadd.f32 %v3034_v13, %v4223_v26  ;;  %v3093_v20 = vpop.f32.mrf.mxu1 }
 0x161   :  { %v3036_v21 = vpop.f32.mrf.mxu0 }
 0x162   :  { %v4264_v17 = vadd.f32 %v3092_v7, %v2084_v19  ;;  %v3037_v22 = vadd.f32 %v3036_v21, %v3035_v18  ;;  %v3094_v24 = vpop.f32.mrf.mxu1 }
 0x163   :  { %v3095_v16 = vadd.f32 %v3094_v24, %v3093_v20  ;;  %v3038_v28 = vpop.f32.mrf.mxu0 }
 0x164   :  { %4423 = vst [vmem:[#allocation5_spill] sm:$0xff] %v4264_v17  ;;  %v2087_v29 = vadd.f32 %v3037_v22, %v4226_v35  ;;  %v3096_v25 = vpop.f32.mrf.mxu1 }
 0x165   :  { %v3039_v30 = vpop.f32.mrf.mxu0 }
 0x166   :  { %v4267_v31 = vadd.f32 %v3095_v16, %v2087_v29  ;;  %v3040_v32 = vadd.f32 %v3039_v30, %v3038_v28  ;;  %v3097_v34 = vpop.f32.mrf.mxu1 }
 0x167   :  { %v3098_v37 = vadd.f32 %v3097_v34, %v3096_v25  ;;  %v3041_v38 = vpop.f32.mrf.mxu0 }
 0x168   :  { %4424 = vst [vmem:[#allocation6_spill] sm:$0xff] %v4267_v31  ;;  %v2092_v26 = vadd.f32 %v3040_v32, %v4229_v44  ;;  %v3099_v39 = vpop.f32.mrf.mxu1 }
 0x169   :  { %v3042_v43 = vpop.f32.mrf.mxu0 }
 0x16a   :  { %v4270_v33 = vadd.f32 %v3098_v37, %v2092_v26  ;;  %v3043_v41 = vadd.f32 %v3042_v43, %v3041_v38  ;;  %v3100_v42 = vpop.f32.mrf.mxu1 }
 0x16b   :  { %v3101_v46 = vadd.f32 %v3100_v42, %v3099_v39  ;;  %v3044_v47 = vpop.f32.mrf.mxu0 }
 0x16c   :  { %v2095_v35 = vadd.f32 %v3043_v41, %v4232_v53  ;;  %v3102_v49 = vpop.f32.mrf.mxu1 }
 0x16d   :  { %v3045_v51 = vpop.f32.mrf.mxu0 }
 0x16e   :  { %v4273_v40 = vadd.f32 %v3101_v46, %v2095_v35  ;;  %v3046_v50 = vadd.f32 %v3045_v51, %v3044_v47  ;;  %v3103_v52 = vpop.f32.mrf.mxu1 }
 0x16f   :  { %v3104_v55 = vadd.f32 %v3103_v52, %v3102_v49  ;;  %v3047_v57 = vpop.f32.mrf.mxu0 }
 0x170   :  { %v2100_v44 = vadd.f32 %v3046_v50, %v4235_v62  ;;  %v3105_v58 = vpop.f32.mrf.mxu1 }
 0x171   :  { %v3048_v60 = vpop.f32.mrf.mxu0 }
 0x172   :  { %v4276_v59 = vadd.f32 %v3104_v55, %v2100_v44  ;;  %v3049_v48 = vadd.f32 %v3048_v60, %v3047_v57  ;;  %v3106_v61 = vpop.f32.mrf.mxu1 }
 0x173   :  { %v3107_v63 = vadd.f32 %v3106_v61, %v3105_v58  ;;  %v3050_v0 = vpop.f32.mrf.mxu0 }
 0x174   :  { %v2103_v53 = vadd.f32 %v3049_v48, %v4238_v6  ;;  %v3108_v1 = vpop.f32.mrf.mxu1 }
 0x175   :  { %v3051_v2 = vpop.f32.mrf.mxu0 }
 0x176   :  { %v4279_v4 = vadd.f32 %v3107_v63, %v2103_v53  ;;  %v3052_v56 = vadd.f32 %v3051_v2, %v3050_v0  ;;  %v3109_v5 = vpop.f32.mrf.mxu1 }
 0x177   :  { %v3110_v8 = vadd.f32 %v3109_v5, %v3108_v1  ;;  %v3053_v9 = vpop.f32.mrf.mxu0 }
 0x178   :  { %v2108_v62 = vadd.f32 %v3052_v56, %v4241_v15  ;;  %v3111_v11 = vpop.f32.mrf.mxu1 }
 0x179   :  { %v3054_v12 = vpop.f32.mrf.mxu0 }
 0x17a   :  { %v4282_v13 = vadd.f32 %v3110_v8, %v2108_v62  ;;  %v3055_v14 = vadd.f32 %v3054_v12, %v3053_v9  ;;  %v3112_v7 = vpop.f32.mrf.mxu1 }
 0x17b   :  { %v3113_v18 = vadd.f32 %v3112_v7, %v3111_v11  ;;  %v3056_v19 = vpop.f32.mrf.mxu0 }
 0x17c   :  { %v2111_v6 = vadd.f32 %v3055_v14, %v4245_v27  ;;  %v3114_v20 = vpop.f32.mrf.mxu1 }
 0x17d   :  { %v3057_v21 = vpop.f32.mrf.mxu0 }
 0x17e   :  { %v4285_v22 = vadd.f32 %v3113_v18, %v2111_v6  ;;  %v3058_v24 = vadd.f32 %v3057_v21, %v3056_v19  ;;  %v3115_v16 = vpop.f32.mrf.mxu1 }
 0x17f   :  { %v3116_v28 = vadd.f32 %v3115_v16, %v3114_v20  ;;  %v4287_v29 = vpop.f32.mrf.mxu0 }
 0x180   :  { %v2116_v15 = vadd.f32 %v3058_v24, %v4248_v36  ;;  %v4290_v25 = vpop.f32.mrf.mxu1 }
 0x181   :  { %v3060_v30 = vpop.f32.mrf.mxu0 }
 0x182   :  { %v4292_v32 = vadd.f32 %v3116_v28, %v2116_v15  ;;  %v4294_v34 = vpop.f32.mrf.mxu1 }
 0x183   :  { %v3062_v37 = vpop.f32.mrf.mxu0 }
 0x184   :  { %v4296_v27 = vpop.f32.mrf.mxu1 }
 0x185   :  { %v3063_v38 = vpop.f32.mrf.mxu0 }
 0x186   :  { %v4298_v26 = vpop.f32.mrf.mxu1 }
 0x187   :  { %v3065_v39 = vpop.f32.mrf.mxu0 }
 0x188   :  { %v3123_v43 = vpop.f32.mrf.mxu1 }
 0x189   :  { %v3066_v41 = vpop.f32.mrf.mxu0 }
 0x18a   :  { %v3124_v42 = vpop.f32.mrf.mxu1 }
 0x18b   :  { %v3142_v46 = vpop.f32.mrf.mxu0 }
 0x18c   :  { %v3200_v47 = vpop.f32.mrf.mxu1 }
 0x18d   :  { %v3143_v36 = vpop.f32.mrf.mxu0 }
 0x18e   :  { %v3144_v35 = vadd.f32 %v3143_v36, %v3142_v46  ;;  %v3201_v49 = vpop.f32.mrf.mxu1 }
 0x18f   :  { %v3202_v51 = vadd.f32 %v3201_v49, %v3200_v47  ;;  %v3145_v50 = vpop.f32.mrf.mxu0 }
 0x190   :  { %v2252_v52 = vadd.f32 %v3144_v35, %v4257_v3  ;;  %v3203_v55 = vpop.f32.mrf.mxu1 }
 0x191   :  { %v3146_v57 = vpop.f32.mrf.mxu0 }
 0x192   :  { %v4301_v44 = vadd.f32 %v3202_v51, %v2252_v52  ;;  %v3147_v58 = vadd.f32 %v3146_v57, %v3145_v50  ;;  %v3204_v60 = vpop.f32.mrf.mxu1  ;;  %v3061_v52 = vadd.f32 %v3060_v30, %v4287_v29 }
 0x193   :  { %v3205_v48 = vadd.f32 %v3204_v60, %v3203_v55  ;;  %v4303_v61 = vpop.f32.mrf.mxu0  ;;  %v3064_v55 = vadd.f32 %v3063_v38, %v3062_v37 }
 0x194   :  { %4425 = vst [vmem:[#allocation7_spill] sm:$0xff] %v4301_v44  ;;  %v2255_v63 = vadd.f32 %v3147_v58, %v4261_v10  ;;  %v4306_v0 = vpop.f32.mrf.mxu1 }
 0x195   :  { %4426 = vst [vmem:[#allocation8_spill] sm:$0xff] %v4306_v0  ;;  %v4308_v53 = vpop.f32.mrf.mxu0  ;;  %v2124_v23 = vadd.f32 %v3064_v55, %v4254_v54  ;;  %v3122_v0 = vadd.f32 %v4298_v26, %v4296_v27 }
 0x196   :  { %v4310_v1 = vadd.f32 %v3205_v48, %v2255_v63  ;;  %v4312_v2 = vpop.f32.mrf.mxu1  ;;  %v2119_v63 = vadd.f32 %v3061_v52, %v4251_v45 }
 0x197   :  { %4428 = vst [vmem:[#allocation10_spill] sm:$0xff] %v4312_v2  ;;  %v4314_v3 = vpop.f32.mrf.mxu0  ;;  %v3119_v2 = vadd.f32 %v4294_v34, %v4290_v25  ;;  %v2212_v37 = vadd.f32 %v3122_v0, %v2124_v23 }
 0x198   :  { %4427 = vst [vmem:[#allocation9_spill] sm:$0xff] %v4310_v1  ;;  %v4316_v56 = vpop.f32.mrf.mxu1 }
 0x199   :  { %4429 = vst [vmem:[#allocation11_spill] sm:$0xff] %v4316_v56  ;;  %v4318_v5 = vpop.f32.mrf.mxu0  ;;  %v2207_v30 = vadd.f32 %v3119_v2, %v2119_v63  ;;  %v4434_v2 = vmov 0.0  }
 0x19a   :  { %v4320_v8 = vpop.f32.mrf.mxu1 }
 0x19b   :  { %4430 = vst [vmem:[#allocation12_spill] sm:$0xff] %v4320_v8  ;;  %v4322_v9 = vpop.f32.mrf.mxu0 }
 0x19c   :  { %v4324_v62 = vpop.f32.mrf.mxu1 }
 0x19d   :  { %4431 = vst [vmem:[#allocation13_spill] sm:$0xff] %v4324_v62  ;;  %v4326_v10 = vpop.f32.mrf.mxu0 }
 0x19e   :  { %v4328_v11 = vpop.f32.mrf.mxu1 }
 0x19f   :  { %4432 = vst [vmem:[#allocation14_spill] sm:$0xff] %v4328_v11  ;;  %v4330_v12 = vpop.f32.mrf.mxu0 }
 0x1a0   :  { %v4332_v14 = vpop.f32.mrf.mxu1 }
 0x1a1   :  { %v4334_v7 = vpop.f32.mrf.mxu0 }
 0x1a2   :  { %v4336_v18 = vpop.f32.mrf.mxu1 }
 0x1a3   :  { %4433 = vst [vmem:[#allocation15_spill] sm:$0xff] %v4336_v18  ;;  %v3160_v19 = vpop.f32.mrf.mxu0 }
 0x1a4   :  { %v4338_v6 = vpop.f32.mrf.mxu1 }
 0x1a5   :  { %v3161_v20 = vpop.f32.mrf.mxu0 }
 0x1a6   :  { %v4340_v21 = vpop.f32.mrf.mxu1 }
 0x1a7   :  { %v3163_v24 = vpop.f32.mrf.mxu0 }
 0x1a8   :  { %v4342_v16 = vpop.f32.mrf.mxu1 }
 0x1a9   :  { %v3164_v28 = vpop.f32.mrf.mxu0 }
 0x1aa   :  { %v4344_v15 = vpop.f32.mrf.mxu1 }
 0x1ab   :  { %v3166_v39 = vpop.f32.mrf.mxu0 }
 0x1ac   :  { %v3224_v43 = vpop.f32.mrf.mxu1 }
 0x1ad   :  { %v3167_v41 = vpop.f32.mrf.mxu0 }
 0x1ae   :  { %v3225_v42 = vpop.f32.mrf.mxu1  ;;  %v3168_v25 = vadd.f32 %v3167_v41, %v3166_v39  ;;  %v4443_v41 = vld [vmem:[#allocation10_spill] sm:$0xff] }
 0x1af   :  { %v3169_v46 = vpop.f32.mrf.mxu0 }
 0x1b0   :  { %v3227_v47 = vpop.f32.mrf.mxu1 }
 0x1b1   :  { %v3170_v36 = vpop.f32.mrf.mxu0 }
 0x1b2   :  { %v3228_v35 = vpop.f32.mrf.mxu1  ;;  %v3171_v45 = vadd.f32 %v3170_v36, %v3169_v46  ;;  %v4444_v36 = vld [vmem:[#allocation9_spill] sm:$0xff] }
 0x1b3   :  { %v3172_v49 = vpop.f32.mrf.mxu0 }
 0x1b4   :  { %v3230_v51 = vpop.f32.mrf.mxu1  ;;  %v2287_v23 = vadd.f32 %v3171_v45, %v4285_v22 }
 0x1b5   :  { %v3173_v50 = vpop.f32.mrf.mxu0 }
 0x1b6   :  { %v3231_v57 = vpop.f32.mrf.mxu1  ;;  %v3174_v38 = vadd.f32 %v3173_v50, %v3172_v49  ;;  %v4445_v49 = vld [vmem:[#allocation7_spill] sm:$0xff] }
 0x1b7   :  { %v3175_v58 = vpop.f32.mrf.mxu0  ;;  %v3232_v0 = vadd.f32 %v3231_v57, %v3230_v51  ;;  %v2773_v51 = vld [vmem:[%s4417_s3] ss:$0 sm:$0xff] }
 0x1b8   :  { %v3233_v60 = vpop.f32.mrf.mxu1  ;;  %v2292_v34 = vadd.f32 %v3174_v38, %v4292_v32  ;;  %v3159_v32 = vadd.f32 %v4334_v7, %v4330_v12  ;;  %v3220_v7 = vadd.f32 %v4340_v21, %v4338_v6  ;;  %v4438_v6 = vld [vmem:[#allocation14_spill] sm:$0xff] }
 0x1b9   :  { %v3176_v48 = vpop.f32.mrf.mxu0 }
 0x1ba   :  { %v3234_v44 = vpop.f32.mrf.mxu1  ;;  %v3177_v8 = vadd.f32 %v3176_v48, %v3175_v58  ;;  %v3165_v48 = vadd.f32 %v3164_v28, %v3163_v24  ;;  %v2271_v12 = vadd.f32 %v3159_v32, %v4273_v40  ;;  %v4436_v40 = vld [vmem:[#allocation6_spill] sm:$0xff] }
 0x1bb   :  { %v3178_v1 = vpop.f32.mrf.mxu0  ;;  %v3235_v27 = vadd.f32 %v3234_v44, %v3233_v60 }
 0x1bc   :  { %v3236_v56 = vpop.f32.mrf.mxu1  ;;  %v2295_v52 = vadd.f32 %v3177_v8, %v2207_v30  ;;  %v3162_v8 = vadd.f32 %v3161_v20, %v3160_v19  ;;  %v2279_v44 = vadd.f32 %v3165_v48, %v4279_v4  ;;  %v3153_v4 = vadd.f32 %v4318_v5, %v4314_v3  ;;  %v4437_v5 = vld [vmem:[#allocation13_spill] sm:$0xff] }
 0x1bd   :  { %v3179_v29 = vpop.f32.mrf.mxu0  ;;  %v3214_v21 = vadd.f32 %v4438_v6, %v4437_v5 }
 0x1be   :  { %v3180_v17 = vadd.f32 %v3179_v29, %v3178_v1  ;;  %v3237_v11 = vpop.f32.mrf.mxu1  ;;  %v2383_v1 = vadd.f32 %v3235_v27, %v2295_v52  ;;  %v2263_v3 = vadd.f32 %v3153_v4, %v4436_v40 }
 0x1bf   :  { %v3181_v62 = vpop.f32.mrf.mxu0  ;;  %v3238_v55 = vadd.f32 %v3237_v11, %v3236_v56  ;;  %v2380_v56 = vadd.f32 %v3232_v0, %v2292_v34  ;;  %v3156_v11 = vadd.f32 %v4326_v10, %v4322_v9  ;;  %v4435_v10 = vld [vmem:[#allocation15_spill] sm:$0xff] }
 0x1c0   :  { %v2300_v54 = vadd.f32 %v3180_v17, %v2212_v37  ;;  %v3239_v31 = vpop.f32.mrf.mxu1  ;;  %v2284_v17 = vadd.f32 %v3168_v25, %v4282_v13  ;;  %v3226_v62 = vadd.f32 %v3225_v42, %v3224_v43  ;;  %v2276_v13 = vadd.f32 %v3162_v8, %v4276_v59 }
 0x1c1   :  { %v3182_v18 = vpop.f32.mrf.mxu0  ;;  %v3229_v31 = vadd.f32 %v3228_v35, %v3227_v47  ;;  %v3150_v59 = vadd.f32 %v4308_v53, %v4303_v61  ;;  %v2268_v9 = vadd.f32 %v3156_v11, %v4270_v33  ;;  %v3217_v24 = vadd.f32 %v4435_v10, %v4332_v14  ;;  %v4440_v53 = vld [vmem:[#allocation11_spill] sm:$0xff]  ;;  %v4441_v33 = vld [vmem:[#allocation12_spill] sm:$0xff] }
 0x1c2   :  { %v2388_v26 = vadd.f32 %v3238_v55, %v2300_v54  ;;  %v3240_v58 = vpop.f32.mrf.mxu1  ;;  %v3223_v18 = vadd.f32 %v4344_v15, %v4342_v16  ;;  %v2372_v19 = vadd.f32 %v3226_v62, %v2284_v17  ;;  %v2364_v16 = vadd.f32 %v3220_v7, %v2276_v13  ;;  %v4439_v15 = vld [vmem:[#allocation5_spill] sm:$0xff]  ;;  %v4442_v14 = vld [vmem:[#allocation8_spill] sm:$0xff] }
 0x1c3   :  { %v2375_v22 = vadd.f32 %v3229_v31, %v2287_v23  ;;  %v2359_v28 = vadd.f32 %v3217_v24, %v2271_v12  ;;  %v2260_v61 = vadd.f32 %v3150_v59, %v4439_v15  ;;  %v3211_v39 = vadd.f32 %v4441_v33, %v4440_v53  ;;  %v2393_v35 = vld [vmem:[%s4416_s2] sm:$0x3] }
 0x1c4   :  { %3257 = vmatpush3.msk.msra.mxu0 %vm2405_vm1, %v2388_v26  ;;  %v2367_v20 = vadd.f32 %v3223_v18, %v2279_v44  ;;  %v2356_v43 = vadd.f32 %v3214_v21, %v2268_v9  ;;  %v3208_v42 = vadd.f32 %v4443_v41, %v4442_v14  ;;  %v2776_v17 = vld [vmem:[%s4418_s4] ss:$0 sm:$0xff] }
 0x1c5   :  { %3258 = vmatprep.subr.mxu0 %v4434_v2  ;;  %v2351_v46 = vadd.f32 %v3211_v39, %v2263_v3 }
 0x1c6   :  { %3259 = vmatpush3.msra.mxu0 %v2383_v1  ;;  %v2348_v47 = vadd.f32 %v3208_v42, %v2260_v61 }
 0x1c7   :  { %3260 = vmatprep.subr.mxu0 %v4434_v2 }
 0x1c8   :  { %3261 = vmatpush3.msra.mxu0 %v2380_v56  ;;  %v2777_v56 = vld [vmem:[%s4419_s5] ss:$0 sm:$0xff] }
 0x1c9   :  { %3262 = vmatprep.subr.mxu0 %v4434_v2 }
 0x1ca   :  { %3263 = vmatpush3.msra.mxu0 %v2375_v22 }
 0x1cb   :  { %3264 = vmatprep.subr.mxu0 %v4434_v2 }
 0x1cc   :  { %3265 = vmatpush3.msra.mxu0 %v2372_v19 }
 0x1cd   :  { %3266 = vmatprep.subr.mxu0 %v4434_v2 }
 0x1ce   :  { %3267 = vmatpush3.msra.mxu0 %v2367_v20 }
 0x1cf   :  { %3268 = vmatprep.subr.mxu0 %v4434_v2 }
 0x1d0   :  { %3269 = vmatpush3.msra.mxu0 %v2364_v16 }
 0x1d1   :  { %3270 = vmatprep.subr.mxu0 %v4434_v2 }
 0x1d2   :  { %3271 = vmatpush3.msra.mxu0 %v2359_v28 }
 0x1d3   :  { %3272 = vmatprep.subr.mxu0 %v4434_v2 }
 0x1d4   :  { %3273 = vmatpush3.msra.mxu0 %v2356_v43 }
 0x1d5   :  { %3274 = vmatprep.subr.mxu0 %v4434_v2 }
 0x1d6   :  { %3275 = vmatpush3.msra.mxu0 %v2351_v46 }
 0x1d7   :  { %3276 = vmatprep.subr.mxu0 %v4434_v2 }
 0x1d8   :  { %3277 = vmatpush3.msra.mxu0 %v2348_v47 }
 0x1d9   :  { %3278 = vmatprep.subr.mxu0 %v4434_v2 }
 0x1da   :  { %3279 = vmatpush3.msra.mxu0 %v4444_v36 }
 0x1db   :  { %3280 = vmatprep.subr.mxu0 %v4434_v2 }
 0x1dc   :  { %3281 = vmatpush3.msra.mxu0 %v4445_v49 }
 0x1dd   :  { %3283 = vmatmul.mubr.msk.f32.vlgmr.msra.gmra.mxu0 %vm2401_vm2, %v2393_v35 }
 0x29d   :  { %v2475_v50 = vpop.f32.mrf.mxu0 }
 0x29e   :  { %v2476_v57 = vadd.f32 %v2773_v51, %v2475_v50 }
 0x29f   :  { %v3284_v60 = vpop.f32.mrf.mxu0 }
 0x2a0   :  { %v2480_v63 = vsel %vm2479_vm3, %v2476_v57, 0.0 }
 0x2a1   :  { %v2481_v29 = vrot.slane %v2480_v63, 4 }
 0x2a3   :  { %v2482_v30 = vadd.f32 %v2481_v29, %v2480_v63 }
 0x2a5   :  { %v2483_v37 = vrot.slane %v2482_v30, 2 }
 0x2a7   :  { %v2484_v38 = vadd.f32 %v2483_v37, %v2482_v30 }
 0x2a9   :  { %v2485_v45 = vrot.slane %v2484_v38, 1 }
 0x2ab   :  { %v2486_v52 = vadd.f32 %v2485_v45, %v2484_v38 }
 0x2ad   :  { %v2488_v54 = vmul.f32 0.5, %v2486_v52 }
 0x2af   :  { %v2489_v55 = vsub.f32 %v2476_v57, %v2488_v54 }
 0x2b1   :  { %v2490_v25 = vmul.f32 %v2489_v55, %v2489_v55 }
 0x2b3   :  { %v2491_v34 = vsel %vm2479_vm3, %v2490_v25, 0.0 }
 0x2b4   :  { %v2492_v27 = vrot.slane %v2491_v34, 4 }
 0x2b6   :  { %v2493_v26 = vadd.f32 %v2492_v27, %v2491_v34 }
 0x2b8   :  { %v2494_v58 = vrot.slane %v2493_v26, 2 }
 0x2ba   :  { %v2495_v48 = vadd.f32 %v2494_v58, %v2493_v26 }
 0x2bc   :  { %v2496_v23 = vrot.slane %v2495_v48, 1 }
 0x2be   :  { %v2497_v0 = vadd.f32 %v2496_v23, %v2495_v48 }
 0x2c0   :  { %v2498_v1 = vmul.f32 0.5, %v2497_v0 }
 0x2c2   :  { %v2499_v2 = vadd.f32 1e-05, %v2498_v1 }
 0x2c4   :  { %3432 = vrsqrt.f32 %v2499_v2 }
 0x2d1   :  { %v3433_v8 = vpop.eup %3432 }
 0x2d2   :  { %v2501_v31 = vmul.f32 %v3433_v8, %v2489_v55 }
 0x2d4   :  { %v2509_v32 = vmul.f32 %v2776_v17, %v2501_v31 }
 0x2d6   :  { %v2517_v44 = vadd.f32 %v2777_v56, %v2509_v32 }
 0x2d8   :  { %2518 = vst.msk [vmem:[#allocation2] sm:$0x3] %vm2479_vm3, %v2517_v44 }
 0x2d9   :  { %3445 = shalt.err (!%p3442_p4)
}
 0x2da   :  { %2528 = dma.vmem_to_hbm [thread:$0]  %s2526_s8, 32, %s4420_s6, [#allocation3]  }
 0x2db   :  { %3454 = dma.done.wait [#allocation3], 32  }
 0x2dc   :  { %3455 = vsyncadd [#allocation3], 4294967264 }
 0x2dd   :  { %2532 = vsyncpa [#allocation3], 1 }

</bundles_post_ra>
